<compile_context>
chip_gen: v7x
topology: tpu7x:2x2x1
jax: 0.10.0
libtpu: 0.0.40
codegen_flags: <defaults>
</compile_context>

<pallas_src>
import functools

import jax
import jax.numpy as jnp
from jax.experimental import pallas as pl
from jax.experimental.pallas import tpu as pltpu

EPS = 1e-5
CP = 128          # lane-padded channel width used inside the fused kernel


# ---------------------------------------------------------------------------
# Fused Pallas kernel (one image per grid step)
# ---------------------------------------------------------------------------
def _sep_block_kernel(x_ref, w1_ref, w2_ref, bn_ref, o_ref,
                      xpad_ref, mpad_ref, *,
                      H, W, Cout, size1, size2, pw_l, ph_l):
    # ---- stage the input with 'same' zero padding along W (all in VMEM) ----
    xpad_ref[...] = jnp.zeros_like(xpad_ref)
    xpad_ref[:, pw_l:pw_l + W, :] = x_ref[0]                        # (H, W, CP)

    # ---- conv1 (1 x size1): one im2col matmul, taps concatenated along K ----
    p1 = jnp.concatenate(
        [xpad_ref[:, kx:kx + W, :].reshape(H * W, CP) for kx in range(size1)],
        axis=-1)                                                    # (H*W, size1*CP)
    acc1 = jnp.dot(p1.astype(jnp.bfloat16), w1_ref[...],
                   preferred_element_type=jnp.float32)              # (H*W, CP) f32
    mid = jnp.maximum(acc1 * bn_ref[0:1, :] + bn_ref[1:2, :], 0.0)  # BN1 + ReLU (f32)

    # ---- stage the intermediate with 'same' zero padding along H ----
    mpad_ref[...] = jnp.zeros_like(mpad_ref)
    mpad_ref[ph_l:ph_l + H, :, :] = mid.reshape(H, W, CP)

    # ---- conv2 (size2 x 1): one im2col matmul over H-shifted taps -----------
    # (H is the outer dim here, so these shifted slices need no sublane relayout)
    p2 = jnp.concatenate(
        [mpad_ref[ky:ky + H, :, :].reshape(H * W, CP) for ky in range(size2)],
        axis=-1)                                                    # (H*W, size2*CP)
    acc2 = jnp.dot(p2.astype(jnp.bfloat16), w2_ref[...],
                   preferred_element_type=jnp.float32)
    y = jnp.maximum(acc2 * bn_ref[2:3, :] + bn_ref[3:4, :], 0.0)    # BN2 + ReLU (f32)

    # ---- un-pad channels only at the very end -------------------------------
    o_ref[0] = y.reshape(H, W, CP)[:, :, :Cout].astype(o_ref.dtype)


# ---------------------------------------------------------------------------
# Trace-time helpers (weight im2col + BatchNorm folding)
# ---------------------------------------------------------------------------
def _im2col_weight(w, cp):
    """(KH, KW, Cin, Cout) conv weight -> zero-padded (KH*KW*cp, cp) bf16 matrix."""
    KH, KW, Cin, Cout = w.shape
    taps = w.reshape(KH * KW, Cin, Cout)
    wp = jnp.zeros((KH * KW, cp, cp), jnp.float32).at[:, :Cin, :Cout].set(taps)
    return wp.reshape(KH * KW * cp, cp).astype(jnp.bfloat16)


def _fold_bn(conv_bias, bn):
    """Fold conv bias + inference BatchNorm into per-channel scale/shift."""
    gamma, beta, mean, var = bn
    scale = gamma / jnp.sqrt(var + EPS)
    shift = (conv_bias - mean) * scale + beta
    return scale, shift


# ---------------------------------------------------------------------------
# Wrapper: NCHW in / NCHW out, single fused pallas_call
# ---------------------------------------------------------------------------
@jax.jit
def separated_conv2d_block(x_nchw, params):
    N, Cin, H, W = x_nchw.shape
    w1, b1 = params['conv1']          # (1, size, Cin, F)
    w2, b2 = params['conv2']          # (size, 1, F, F)
    F = w1.shape[-1]
    size1 = w1.shape[1]               # conv1 kernel = (1, size1)  -> pads W
    size2 = w2.shape[0]               # conv2 kernel = (size2, 1)  -> pads H
    pw_l = (size1 - 1) // 2           # PyTorch padding='same' (asymmetric if even)
    ph_l = (size2 - 1) // 2

    # NCHW -> NHWC, pad channels to CP once; they stay lane-dense in the kernel.
    x = jnp.transpose(x_nchw, (0, 2, 3, 1))
    x = jnp.pad(x, ((0, 0), (0, 0), (0, 0), (0, CP - Cin)))

    w1_mat = _im2col_weight(w1, CP)               # (size1*CP, CP) bf16
    w2_mat = _im2col_weight(w2, CP)               # (size2*CP, CP) bf16
    s1, c1 = _fold_bn(b1, params['bn1'])
    s2, c2 = _fold_bn(b2, params['bn2'])
    bn_stack = jnp.zeros((4, CP), jnp.float32)
    bn_stack = bn_stack.at[0, :F].set(s1).at[1, :F].set(c1)
    bn_stack = bn_stack.at[2, :F].set(s2).at[3, :F].set(c2)

    kernel = functools.partial(
        _sep_block_kernel, H=H, W=W, Cout=F,
        size1=size1, size2=size2, pw_l=pw_l, ph_l=ph_l)

    out = pl.pallas_call(
        kernel,
        out_shape=jax.ShapeDtypeStruct((N, H, W, F), x_nchw.dtype),
        grid_spec=pltpu.PrefetchScalarGridSpec(
            num_scalar_prefetch=0,
            grid=(N,),
            in_specs=[
                pl.BlockSpec((1, H, W, CP), lambda n: (n, 0, 0, 0)),
                pl.BlockSpec((size1 * CP, CP), lambda n: (0, 0)),
                pl.BlockSpec((size2 * CP, CP), lambda n: (0, 0)),
                pl.BlockSpec((4, CP), lambda n: (0, 0)),
            ],
            out_specs=pl.BlockSpec((1, H, W, F), lambda n: (n, 0, 0, 0)),
            scratch_shapes=[
                pltpu.VMEM((H, W + size1 - 1, CP), jnp.float32),   # W-padded input
                pltpu.VMEM((H + size2 - 1, W, CP), jnp.float32),   # H-padded mid act
            ],
        ),
        compiler_params=pltpu.CompilerParams(
            dimension_semantics=("parallel",),
            vmem_limit_bytes=32 * 1024 * 1024,
        ),
    )(x, w1_mat, w2_mat, bn_stack)

    return jnp.transpose(out, (0, 3, 1, 2))       # NHWC -> NCHW


# ---------------------------------------------------------------------------
# Deterministic parameter init (he_uniform-style, matching the PyTorch module)
# ---------------------------------------------------------------------------
def make_conv_params(key, kh, kw, cin, cout):
    k1, k2 = jax.random.split(key)
    fan_in = cin * kh * kw
    limit = (6.0 / fan_in) ** 0.5
    w = jax.random.uniform(k1, (kh, kw, cin, cout), jnp.float32, -limit, limit)
    blim = (1.0 / fan_in) ** 0.5
    b = jax.random.uniform(k2, (cout,), jnp.float32, -blim, blim)
    return w, b


def make_bn_params(key, c):
    k1, k2, k3, k4 = jax.random.split(key, 4)
    gamma = jax.random.uniform(k1, (c,), jnp.float32, 0.8, 1.2)
    beta = jax.random.uniform(k2, (c,), jnp.float32, -0.1, 0.1)
    mean = jax.random.uniform(k3, (c,), jnp.float32, -0.1, 0.1)
    var = jax.random.uniform(k4, (c,), jnp.float32, 0.5, 1.5)
    return gamma, beta, mean, var


def init_separated_params(key, in_chans, filters, size):
    k1, k2, k3, k4 = jax.random.split(key, 4)
    return {
        'conv1': make_conv_params(k1, 1, size, in_chans, filters),
        'bn1': make_bn_params(k2, filters),
        'conv2': make_conv_params(k3, size, 1, filters, filters),
        'bn2': make_bn_params(k4, filters),
    }


# ---------------------------------------------------------------------------
if __name__ == "__main__":
    key = jax.random.PRNGKey(0)
    k_x, k_p = jax.random.split(key)

    N, Cin, H, W = 2, 4, 16, 16
    filters, size = 4, 3

    x = jax.random.normal(k_x, (N, Cin, H, W), jnp.float32)   # NCHW like PyTorch
    params = init_separated_params(k_p, Cin, filters, size)

    out = separated_conv2d_block(x, params)
    out = jax.block_until_ready(out)
    assert out.shape == (N, filters, H, W)
    assert bool(jnp.all(jnp.isfinite(out)))
    print("KERNEL_OK")
</pallas_src>

<mosaic_0001>
module attributes {stable_mosaic.version = 11 : i64} {
  func.func @_sep_block_kernel(%arg0: i32, %arg1: memref<1x16x16x128xf32, #tpu.memory_space<vmem>>, %arg2: memref<384x128xbf16, #tpu.memory_space<vmem>>, %arg3: memref<384x128xbf16, #tpu.memory_space<vmem>>, %arg4: memref<4x128xf32, #tpu.memory_space<vmem>>, %arg5: memref<1x16x16x4xf32, #tpu.memory_space<vmem>>, %arg6: memref<16x18x128xf32, #tpu.memory_space<vmem>>, %arg7: memref<18x16x128xf32, #tpu.memory_space<vmem>>) attributes {dimension_semantics = [#tpu.dimension_semantics<parallel>], iteration_bounds = array<i64: 2>, scalar_prefetch = 0 : i64, scratch_operands = 2 : i64, tpu.core_type = #tpu.core_type<tc>, window_params = [{transform_indices = @transform_0, window_bounds = array<i64: 1, 16, 16, 128>}, {pipeline_mode = #tpu.pipeline_mode<synchronous>, transform_indices = @transform_1, window_bounds = array<i64: 384, 128>}, {pipeline_mode = #tpu.pipeline_mode<synchronous>, transform_indices = @transform_2, window_bounds = array<i64: 384, 128>}, {pipeline_mode = #tpu.pipeline_mode<synchronous>, transform_indices = @transform_3, window_bounds = array<i64: 4, 128>}, {transform_indices = @transform_4, window_bounds = array<i64: 1, 16, 16, 4>}]} {
    %cst = arith.constant 0.000000e+00 : f32
    %0 = vector.broadcast %cst : f32 to vector<16x18x128xf32>
    %c0 = arith.constant 0 : index
    %c0_0 = arith.constant 0 : index
    %c0_1 = arith.constant 0 : index
    %1 = vector.load %arg6[%c0, %c0_0, %c0_1] : memref<16x18x128xf32, #tpu.memory_space<vmem>>, vector<16x18x128xf32>
    tpu.vector_store %arg6[%c0, %c0_0, %c0_1], %0 {strides = array<i32>} : memref<16x18x128xf32, #tpu.memory_space<vmem>>, vector<16x18x128xf32>,
    %c0_2 = arith.constant 0 : index
    %c0_3 = arith.constant 0 : index
    %c0_4 = arith.constant 0 : index
    %c0_5 = arith.constant 0 : index
    %2 = vector.load %arg1[%c0_2, %c0_3, %c0_4, %c0_5] : memref<1x16x16x128xf32, #tpu.memory_space<vmem>>, vector<1x16x16x128xf32>
    %3 = vector.shape_cast %2 : vector<1x16x16x128xf32> to vector<16x16x128xf32>
    %c0_6 = arith.constant 0 : index
    %c1 = arith.constant 1 : index
    %c0_7 = arith.constant 0 : index
    %4 = vector.load %arg6[%c0_6, %c1, %c0_7] : memref<16x18x128xf32, #tpu.memory_space<vmem>>, vector<16x16x128xf32>
    tpu.vector_store %arg6[%c0_6, %c1, %c0_7], %3 {strides = array<i32>} : memref<16x18x128xf32, #tpu.memory_space<vmem>>, vector<16x16x128xf32>,
    %c0_8 = arith.constant 0 : index
    %c0_9 = arith.constant 0 : index
    %c0_10 = arith.constant 0 : index
    %5 = vector.load %arg6[%c0_8, %c0_9, %c0_10] : memref<16x18x128xf32, #tpu.memory_space<vmem>>, vector<16x16x128xf32>
    %6 = vector.shape_cast %5 : vector<16x16x128xf32> to vector<256x128xf32>
    %c0_11 = arith.constant 0 : index
    %c1_12 = arith.constant 1 : index
    %c0_13 = arith.constant 0 : index
    %7 = vector.load %arg6[%c0_11, %c1_12, %c0_13] : memref<16x18x128xf32, #tpu.memory_space<vmem>>, vector<16x16x128xf32>
    %8 = vector.shape_cast %7 : vector<16x16x128xf32> to vector<256x128xf32>
    %c0_14 = arith.constant 0 : index
    %c2 = arith.constant 2 : index
    %c0_15 = arith.constant 0 : index
    %9 = vector.load %arg6[%c0_14, %c2, %c0_15] : memref<16x18x128xf32, #tpu.memory_space<vmem>>, vector<16x16x128xf32>
    %10 = vector.shape_cast %9 : vector<16x16x128xf32> to vector<256x128xf32>
    %11 = tpu.concatenate %6, %8, %10 in 1 : vector<256x128xf32>, vector<256x128xf32>, vector<256x128xf32> -> vector<256x384xf32>
    %12 = arith.truncf %11 : vector<256x384xf32> to vector<256x384xbf16>
    %c0_16 = arith.constant 0 : index
    %c0_17 = arith.constant 0 : index
    %13 = vector.load %arg2[%c0_16, %c0_17] : memref<384x128xbf16, #tpu.memory_space<vmem>>, vector<384x128xbf16>
    %cst_18 = arith.constant dense<0.000000e+00> : vector<256x128xf32>
    %14 = tpu.matmul %12, %13, %cst_18 {dimension_numbers = #tpu.dot_dimension_numbers<[1], [0], [0], [1], [0, 0, 1, 1], [], []>} : vector<256x384xbf16>, vector<384x128xbf16>, vector<256x128xf32> -> vector<256x128xf32>
    %c0_19 = arith.constant 0 : index
    %c0_20 = arith.constant 0 : index
    %15 = vector.load %arg4[%c0_19, %c0_20] : memref<4x128xf32, #tpu.memory_space<vmem>>, vector<1x128xf32>
    %16 = vector.broadcast %15 : vector<1x128xf32> to vector<256x128xf32>
    %17 = arith.mulf %14, %16 : vector<256x128xf32>
    %c1_21 = arith.constant 1 : index
    %c0_22 = arith.constant 0 : index
    %18 = vector.load %arg4[%c1_21, %c0_22] : memref<4x128xf32, #tpu.memory_space<vmem>>, vector<1x128xf32>
    %19 = vector.broadcast %18 : vector<1x128xf32> to vector<256x128xf32>
    %20 = arith.addf %17, %19 : vector<256x128xf32>
    %cst_23 = arith.constant 0.000000e+00 : f32
    %21 = vector.broadcast %cst_23 : f32 to vector<256x128xf32>
    %22 = arith.maximumf %20, %21 : vector<256x128xf32>
    %cst_24 = arith.constant 0.000000e+00 : f32
    %23 = vector.broadcast %cst_24 : f32 to vector<18x16x128xf32>
    %c0_25 = arith.constant 0 : index
    %c0_26 = arith.constant 0 : index
    %c0_27 = arith.constant 0 : index
    %24 = vector.load %arg7[%c0_25, %c0_26, %c0_27] : memref<18x16x128xf32, #tpu.memory_space<vmem>>, vector<18x16x128xf32>
    tpu.vector_store %arg7[%c0_25, %c0_26, %c0_27], %23 {strides = array<i32>} : memref<18x16x128xf32, #tpu.memory_space<vmem>>, vector<18x16x128xf32>,
    %25 = vector.shape_cast %22 : vector<256x128xf32> to vector<16x16x128xf32>
    %c1_28 = arith.constant 1 : index
    %c0_29 = arith.constant 0 : index
    %c0_30 = arith.constant 0 : index
    %26 = vector.load %arg7[%c1_28, %c0_29, %c0_30] : memref<18x16x128xf32, #tpu.memory_space<vmem>>, vector<16x16x128xf32>
    tpu.vector_store %arg7[%c1_28, %c0_29, %c0_30], %25 {strides = array<i32>} : memref<18x16x128xf32, #tpu.memory_space<vmem>>, vector<16x16x128xf32>,
    %c0_31 = arith.constant 0 : index
    %c0_32 = arith.constant 0 : index
    %c0_33 = arith.constant 0 : index
    %27 = vector.load %arg7[%c0_31, %c0_32, %c0_33] : memref<18x16x128xf32, #tpu.memory_space<vmem>>, vector<16x16x128xf32>
    %28 = vector.shape_cast %27 : vector<16x16x128xf32> to vector<256x128xf32>
    %c1_34 = arith.constant 1 : index
    %c0_35 = arith.constant 0 : index
    %c0_36 = arith.constant 0 : index
    %29 = vector.load %arg7[%c1_34, %c0_35, %c0_36] : memref<18x16x128xf32, #tpu.memory_space<vmem>>, vector<16x16x128xf32>
    %30 = vector.shape_cast %29 : vector<16x16x128xf32> to vector<256x128xf32>
    %c2_37 = arith.constant 2 : index
    %c0_38 = arith.constant 0 : index
    %c0_39 = arith.constant 0 : index
    %31 = vector.load %arg7[%c2_37, %c0_38, %c0_39] : memref<18x16x128xf32, #tpu.memory_space<vmem>>, vector<16x16x128xf32>
    %32 = vector.shape_cast %31 : vector<16x16x128xf32> to vector<256x128xf32>
    %33 = tpu.concatenate %28, %30, %32 in 1 : vector<256x128xf32>, vector<256x128xf32>, vector<256x128xf32> -> vector<256x384xf32>
    %34 = arith.truncf %33 : vector<256x384xf32> to vector<256x384xbf16>
    %c0_40 = arith.constant 0 : index
    %c0_41 = arith.constant 0 : index
    %35 = vector.load %arg3[%c0_40, %c0_41] : memref<384x128xbf16, #tpu.memory_space<vmem>>, vector<384x128xbf16>
    %cst_42 = arith.constant dense<0.000000e+00> : vector<256x128xf32>
    %36 = tpu.matmul %34, %35, %cst_42 {dimension_numbers = #tpu.dot_dimension_numbers<[1], [0], [0], [1], [0, 0, 1, 1], [], []>} : vector<256x384xbf16>, vector<384x128xbf16>, vector<256x128xf32> -> vector<256x128xf32>
    %c2_43 = arith.constant 2 : index
    %c0_44 = arith.constant 0 : index
    %37 = vector.load %arg4[%c2_43, %c0_44] : memref<4x128xf32, #tpu.memory_space<vmem>>, vector<1x128xf32>
    %38 = vector.broadcast %37 : vector<1x128xf32> to vector<256x128xf32>
    %39 = arith.mulf %36, %38 : vector<256x128xf32>
    %c3 = arith.constant 3 : index
    %c0_45 = arith.constant 0 : index
    %40 = vector.load %arg4[%c3, %c0_45] : memref<4x128xf32, #tpu.memory_space<vmem>>, vector<1x128xf32>
    %41 = vector.broadcast %40 : vector<1x128xf32> to vector<256x128xf32>
    %42 = arith.addf %39, %41 : vector<256x128xf32>
    %cst_46 = arith.constant 0.000000e+00 : f32
    %43 = vector.broadcast %cst_46 : f32 to vector<256x128xf32>
    %44 = arith.maximumf %42, %43 : vector<256x128xf32>
    %45 = vector.shape_cast %44 : vector<256x128xf32> to vector<16x16x128xf32>
    %46 = vector.extract_strided_slice %45 {offsets = [0, 0, 0], sizes = [16, 16, 4], strides = [1, 1, 1]} : vector<16x16x128xf32> to vector<16x16x4xf32>
    %c0_47 = arith.constant 0 : index
    %c0_48 = arith.constant 0 : index
    %c0_49 = arith.constant 0 : index
    %c0_50 = arith.constant 0 : index
    %47 = vector.load %arg5[%c0_47, %c0_48, %c0_49, %c0_50] : memref<1x16x16x4xf32, #tpu.memory_space<vmem>>, vector<1x16x16x4xf32>
    %48 = vector.shape_cast %47 : vector<1x16x16x4xf32> to vector<16x16x4xf32>
    %49 = vector.shape_cast %46 : vector<16x16x4xf32> to vector<1x16x16x4xf32>
    tpu.vector_store %arg5[%c0_47, %c0_48, %c0_49, %c0_50], %49 {strides = array<i32>} : memref<1x16x16x4xf32, #tpu.memory_space<vmem>>, vector<1x16x16x4xf32>,
    return
  }
  func.func @transform_0(%arg0: i32) -> (i32, i32, i32, i32) {
    %c0_i32 = arith.constant 0 : i32
    %c0_i32_0 = arith.constant 0 : i32
    %c0_i32_1 = arith.constant 0 : i32
    %c0_i32_2 = arith.constant 0 : i32
    return %arg0, %c0_i32, %c0_i32_0, %c0_i32_1 : i32, i32, i32, i32
  }
  func.func @transform_1(%arg0: i32) -> (i32, i32) {
    %c0_i32 = arith.constant 0 : i32
    %c0_i32_0 = arith.constant 0 : i32
    %c0_i32_1 = arith.constant 0 : i32
    return %c0_i32, %c0_i32_0 : i32, i32
  }
  func.func @transform_2(%arg0: i32) -> (i32, i32) {
    %c0_i32 = arith.constant 0 : i32
    %c0_i32_0 = arith.constant 0 : i32
    %c0_i32_1 = arith.constant 0 : i32
    return %c0_i32, %c0_i32_0 : i32, i32
  }
  func.func @transform_3(%arg0: i32) -> (i32, i32) {
    %c0_i32 = arith.constant 0 : i32
    %c0_i32_0 = arith.constant 0 : i32
    %c0_i32_1 = arith.constant 0 : i32
    return %c0_i32, %c0_i32_0 : i32, i32
  }
  func.func @transform_4(%arg0: i32) -> (i32, i32, i32, i32) {
    %c0_i32 = arith.constant 0 : i32
    %c0_i32_0 = arith.constant 0 : i32
    %c0_i32_1 = arith.constant 0 : i32
    %c0_i32_2 = arith.constant 0 : i32
    return %arg0, %c0_i32, %c0_i32_0, %c0_i32_1 : i32, i32, i32, i32
  }
}

</mosaic_0001>

<bundles_post_ra>
// kernel: separated_conv2d_block.1
= control target key start
LH: loop header
LB: loop body
LE: loop exit
PB: predicated region body
PF: predicated region fallthrough
CT: control target
= control target key end

     0   :  { %s2523_s15 = smov 0   ;;  %s3152_s0 = inlined_call_operand.vmem [shape: f32[2,16,16,128], index: 0, kind: input, shape index: {}]   ;;  %s3153_s1 = inlined_call_operand.vmem [shape: bf16[384,128], index: 1, kind: input, shape index: {}]   ;;  %s3154_s2 = inlined_call_operand.vmem [shape: bf16[384,128], index: 2, kind: input, shape index: {}]   ;;  %s3155_s3 = inlined_call_operand.vmem [shape: f32[4,128], index: 3, kind: input, shape index: {}]   ;;  %s3156_s4 = inlined_call_operand.vmem [shape: f32[2,16,16,4], index: 4, kind: output, shape index: {}]  }
   0x1 LB: > { %s1997_s16 = sadd.s32 4294967295, %s2494_s15   ;;  %p2001_p0 = scmp.ge.s32.totalorder %s2494_s15, 1  ;;  %s2494_s15 = sphi %s2523_s15, %s14_s15  }
   0x2   : > { %p162_p1 = scmp.lt.s32.totalorder %s2494_s15, 3 }
   0x4   : > { %p163_p2 = pnand %p2001_p0, %p162_p1 }
   0x5   : > { %v2440_v0 = vld [vmem:[%s3153_s1 + $0x40] sm:$0xff] (!%p163_p2)   ;;  %v2496_v3 = vmov (!%p163_p2), 0.0   ;;  %v2443_v4 = vld [vmem:[%s3153_s1 + $0x48] sm:$0xff] (!%p163_p2)   ;;  %v2446_v7 = vld [vmem:[%s3153_s1 + $0x50] sm:$0xff] (!%p163_p2)   ;;  %p188_p3 = scmp.lt.s32.totalorder (!%p163_p2), %s1997_s16, 1  ;;  %vm1909_vm0 = vcmask (!%p163_p2), 31744  }
   0x6   : > { %166 = sbr.rel (%p163_p2) target bundleno = 615 (0x267), region = 36  ;;  %v2441_v1 = vld [vmem:[%s3153_s1 + $0x80] sm:$0xff] (!%p163_p2)   ;;  %2062 = vmatprep.subr.bf16.mxu0 (!%p163_p2), %v2440_v0  ;;  %199 = vst [vmem:[#allocation2] sm:$0xff] (!%p163_p2), %v2496_v3  ;;  %200 = vst [vmem:[#allocation2 + $0x8] sm:$0xff] (!%p163_p2), %v2496_v3  ;;  %v2444_v5 = vld [vmem:[%s3153_s1 + $0x88] sm:$0xff] (!%p163_p2)  }
   0x7   : > { %v2442_v2 = vld [vmem:[%s3153_s1] sm:$0xff] (!%p163_p2)   ;;  %201 = vst [vmem:[#allocation2 + $0x10] sm:$0x3] (!%p163_p2), %v2496_v3  ;;  %202 = vst [vmem:[#allocation2 + $0x18] sm:$0xff] (!%p163_p2), %v2496_v3  ;;  %2334 = vmatprep.subr.bf16.mxu1 (!%p163_p2), %v2441_v1  ;;  %v2445_v6 = vld [vmem:[%s3153_s1 + $0x8] sm:$0xff] (!%p163_p2)  }
   0x8   : > { %203 = vst [vmem:[#allocation2 + $0x20] sm:$0xff] (!%p163_p2), %v2496_v3  ;;  %204 = vst [vmem:[#allocation2 + $0x28] sm:$0x3] (!%p163_p2), %v2496_v3  ;;  %2063 = vmatpush3.bf16.msra.mxu0 (!%p163_p2), %v2442_v2  ;;  %2335 = vmatpush3.bf16.msra.mxu1 (!%p163_p2), %v2441_v1  ;;  %v2447_v8 = vld [vmem:[%s3153_s1 + $0x90] sm:$0xff] (!%p163_p2)   ;;  %v2449_v10 = vld [vmem:[%s3153_s1 + $0x58] sm:$0xff] (!%p163_p2)  }
   0x9   : > { %205 = vst [vmem:[#allocation2 + $0x30] sm:$0xff] (!%p163_p2), %v2496_v3  ;;  %206 = vst [vmem:[#allocation2 + $0x38] sm:$0xff] (!%p163_p2), %v2496_v3  ;;  %2064 = vmatprep.subr.bf16.mxu0 (!%p163_p2), %v2443_v4  ;;  %2336 = vmatprep.subr.bf16.mxu1 (!%p163_p2), %v2444_v5  ;;  %v2448_v9 = vld [vmem:[%s3153_s1 + $0x10] sm:$0xff] (!%p163_p2)   ;;  %v2450_v11 = vld [vmem:[%s3153_s1 + $0x98] sm:$0xff] (!%p163_p2)  }
   0xa   : > { %207 = vst [vmem:[#allocation2 + $0x40] sm:$0x3] (!%p163_p2), %v2496_v3  ;;  %208 = vst [vmem:[#allocation2 + $0x48] sm:$0xff] (!%p163_p2), %v2496_v3  ;;  %v2451_v12 = vld [vmem:[%s3153_s1 + $0x18] sm:$0xff] (!%p163_p2)   ;;  %v2452_v13 = vld [vmem:[%s3153_s1 + $0x60] sm:$0xff] (!%p163_p2)  }
   0xb   : > { %209 = vst [vmem:[#allocation2 + $0x50] sm:$0xff] (!%p163_p2), %v2496_v3  ;;  %210 = vst [vmem:[#allocation2 + $0x58] sm:$0x3] (!%p163_p2), %v2496_v3  ;;  %v2453_v14 = vld [vmem:[%s3153_s1 + $0xa0] sm:$0xff] (!%p163_p2)   ;;  %v2455_v16 = vld [vmem:[%s3153_s1 + $0x68] sm:$0xff] (!%p163_p2)  }
   0xc   : > { %211 = vst [vmem:[#allocation2 + $0x60] sm:$0xff] (!%p163_p2), %v2496_v3  ;;  %212 = vst [vmem:[#allocation2 + $0x68] sm:$0xff] (!%p163_p2), %v2496_v3  ;;  %2065 = vmatpush3.bf16.msra.mxu0 (!%p163_p2), %v2445_v6  ;;  %2337 = vmatpush3.bf16.msra.mxu1 (!%p163_p2), %v2444_v5  ;;  %v2454_v15 = vld [vmem:[%s3153_s1 + $0x20] sm:$0xff] (!%p163_p2)   ;;  %v2456_v17 = vld [vmem:[%s3153_s1 + $0xa8] sm:$0xff] (!%p163_p2)  }
   0xd   : > { %213 = vst [vmem:[#allocation2 + $0x70] sm:$0x3] %v2496_v3  ;;  %214 = vst [vmem:[#allocation2 + $0x78] sm:$0xff] %v2496_v3  ;;  %2066 = vmatprep.subr.bf16.mxu0 %v2446_v7  ;;  %2338 = vmatprep.subr.bf16.mxu1 %v2447_v8  ;;  %s3158_s16 = smov (!%p188_p3, %s1997_s16), 1  ;;  %v2457_v18 = vld [vmem:[%s3153_s1 + $0x28] sm:$0xff]   ;;  %v2458_v19 = vld [vmem:[%s3153_s1 + $0x70] sm:$0xff]  }
   0xe   : > { %215 = vst [vmem:[#allocation2 + $0x80] sm:$0xff] %v2496_v3  ;;  %216 = vst [vmem:[#allocation2 + $0x88] sm:$0x3] %v2496_v3  ;;  %s2060_s27 = sshll.u32 %s3158_s16, 8  ;;  %v2459_v20 = vld [vmem:[%s3153_s1 + $0xb0] sm:$0xff]   ;;  %v2461_v22 = vld [vmem:[%s3153_s1 + $0x78] sm:$0xff]  }
   0xf   : > { %217 = vst [vmem:[#allocation2 + $0x90] sm:$0xff] %v2496_v3  ;;  %218 = vst [vmem:[#allocation2 + $0x98] sm:$0xff] %v2496_v3  ;;  %s2603_s10 = scalar_lea.vmem %s3152_s0, %s2060_s27  ;;  %v2460_v21 = vld [vmem:[%s3153_s1 + $0x30] sm:$0xff]   ;;  %v2462_v23 = vld [vmem:[%s3153_s1 + $0xb8] sm:$0xff]   ;;  %s3023_s8 = scalar_lea.vmem %s3156_s4, %s2060_s27 }
  0x10   : > { %219 = vst [vmem:[#allocation2 + $0xa0] sm:$0x3] %v2496_v3  ;;  %220 = vst [vmem:[#allocation2 + $0xa8] sm:$0xff] %v2496_v3  ;;  %2067 = vmatpush3.bf16.msra.mxu0 %v2448_v9  ;;  %2339 = vmatpush3.bf16.msra.mxu1 %v2447_v8  ;;  %v247_v24 = vld [vmem:[%s2603_s10] sm:$0xff]  ;;  %v248_v25 = vld [vmem:[%s2603_s10 + $0x8] sm:$0xff] }
  0x11   : > { %221 = vst [vmem:[#allocation2 + $0xb0] sm:$0xff] %v2496_v3  ;;  %222 = vst [vmem:[#allocation2 + $0xb8] sm:$0x3] %v2496_v3  ;;  %2068 = vmatprep.subr.bf16.mxu0 %v2449_v10  ;;  %2340 = vmatprep.subr.bf16.mxu1 %v2450_v11  ;;  %v2617_v26 = vld [vmem:[%s2603_s10 + $0x10] sm:$0xff]  ;;  %v408_v27 = vpack.c.bf16 %v248_v25, %v247_v24  ;;  %v2620_v28 = vld [vmem:[%s2603_s10 + $0x18] sm:$0xff] }
  0x12   : > { %223 = vst [vmem:[#allocation2 + $0xc0] sm:$0xff] %v2496_v3  ;;  %224 = vst [vmem:[#allocation2 + $0xc8] sm:$0xff] %v2496_v3  ;;  %v2624_v29 = vld [vmem:[%s2603_s10 + $0x20] sm:$0xff]  ;;  %v2627_v30 = vld [vmem:[%s2603_s10 + $0x28] sm:$0xff]  ;;  %v411_v60 = vpack.c.bf16 %v2620_v28, %v2617_v26 }
  0x13   : > { %225 = vst [vmem:[#allocation2 + $0xd0] sm:$0x3] %v2496_v3  ;;  %226 = vst [vmem:[#allocation2 + $0xd8] sm:$0xff] %v2496_v3  ;;  %v2463_v31 = vld [vmem:[%s3153_s1 + $0x38] sm:$0xff]   ;;  %v2636_v32 = vld [vmem:[%s2603_s10 + $0x30] sm:$0xff]  ;;  %679 = vmatprep.mubr.bf16.mxu0 %v408_v27  ;;  %v414_v10 = vpack.c.bf16 %v2627_v30, %v2624_v29 }
  0x14   : > { %227 = vst [vmem:[#allocation2 + $0xe0] sm:$0xff] %v2496_v3  ;;  %228 = vst [vmem:[#allocation2 + $0xe8] sm:$0x3] %v2496_v3  ;;  %2069 = vmatpush3.bf16.msra.mxu0 %v2451_v12  ;;  %2341 = vmatpush3.bf16.msra.mxu1 %v2450_v11  ;;  %v2639_v33 = vld [vmem:[%s2603_s10 + $0x38] sm:$0xff]  ;;  %v2642_v34 = vld [vmem:[%s2603_s10 + $0x40] sm:$0xff] }
  0x15   : > { %229 = vst [vmem:[#allocation2 + $0xf0] sm:$0xff] %v2496_v3  ;;  %230 = vst [vmem:[#allocation2 + $0xf8] sm:$0xff] %v2496_v3  ;;  %2070 = vmatprep.subr.bf16.mxu0 %v2452_v13  ;;  %2342 = vmatprep.subr.bf16.mxu1 %v2453_v14  ;;  %v2647_v35 = vld [vmem:[%s2603_s10 + $0x48] sm:$0xff]  ;;  %v2651_v36 = vld [vmem:[%s2603_s10 + $0x50] sm:$0xff] }
  0x16   : > { %231 = vst [vmem:[#allocation2 + $0x100] sm:$0x3] %v2496_v3  ;;  %232 = vst [vmem:[#allocation2 + $0x108] sm:$0xff] %v2496_v3  ;;  %v2654_v37 = vld [vmem:[%s2603_s10 + $0x58] sm:$0xff]  ;;  %v2660_v38 = vld [vmem:[%s2603_s10 + $0x60] sm:$0xff] }
  0x17   : > { %233 = vst [vmem:[#allocation2 + $0x110] sm:$0xff] %v2496_v3  ;;  %234 = vst [vmem:[#allocation2 + $0x118] sm:$0x3] %v2496_v3  ;;  %v2663_v39 = vld [vmem:[%s2603_s10 + $0x68] sm:$0xff]  ;;  %v2666_v40 = vld [vmem:[%s2603_s10 + $0x70] sm:$0xff] }
  0x18   : > { %235 = vst [vmem:[#allocation2 + $0x120] sm:$0xff] %v2496_v3  ;;  %236 = vst [vmem:[#allocation2 + $0x128] sm:$0xff] %v2496_v3  ;;  %2071 = vmatpush3.bf16.msra.mxu0 %v2454_v15  ;;  %2343 = vmatpush3.bf16.msra.mxu1 %v2453_v14  ;;  %v2671_v41 = vld [vmem:[%s2603_s10 + $0x78] sm:$0xff]  ;;  %v2675_v42 = vld [vmem:[%s2603_s10 + $0x80] sm:$0xff] }
  0x19   : > { %237 = vst [vmem:[#allocation2 + $0x130] sm:$0x3] %v2496_v3  ;;  %238 = vst [vmem:[#allocation2 + $0x138] sm:$0xff] %v2496_v3  ;;  %2072 = vmatprep.subr.bf16.mxu0 %v2455_v16  ;;  %2344 = vmatprep.subr.bf16.mxu1 %v2456_v17  ;;  %v2678_v43 = vld [vmem:[%s2603_s10 + $0x88] sm:$0xff]  ;;  %v2684_v44 = vld [vmem:[%s2603_s10 + $0x90] sm:$0xff] }
  0x1a   : > { %239 = vst [vmem:[#allocation2 + $0x140] sm:$0xff] %v2496_v3  ;;  %240 = vst [vmem:[#allocation2 + $0x148] sm:$0x3] %v2496_v3  ;;  %v2687_v45 = vld [vmem:[%s2603_s10 + $0x98] sm:$0xff]  ;;  %v2690_v46 = vld [vmem:[%s2603_s10 + $0xa0] sm:$0xff] }
  0x1b   : > { %241 = vst [vmem:[#allocation2 + $0x150] sm:$0xff] %v2496_v3  ;;  %242 = vst [vmem:[#allocation2 + $0x158] sm:$0xff] %v2496_v3  ;;  %v435_v47 = vpack.c.bf16 %v2687_v45, %v2684_v44  ;;  %v2697_v48 = vld [vmem:[%s2603_s10 + $0xa8] sm:$0xff]  ;;  %v2701_v49 = vld [vmem:[%s2603_s10 + $0xb0] sm:$0xff] }
  0x1c   : > { %243 = vst [vmem:[#allocation2 + $0x160] sm:$0x3] %v2496_v3  ;;  %244 = vst [vmem:[#allocation2 + $0x168] sm:$0xff] %v2496_v3  ;;  %2073 = vmatpush3.bf16.msra.mxu0 %v2457_v18  ;;  %2345 = vmatpush3.bf16.msra.mxu1 %v2456_v17  ;;  %v2704_v50 = vld [vmem:[%s2603_s10 + $0xb8] sm:$0xff]  ;;  %v438_v54 = vpack.c.bf16 %v2697_v48, %v2690_v46  ;;  %v2737_v27 = vld [vmem:[%s2603_s10 + $0xe0] sm:$0xff] }
  0x1d   : > { %245 = vst [vmem:[#allocation2 + $0x170] sm:$0xff] %v2496_v3  ;;  %246 = vst [vmem:[#allocation2 + $0x178] sm:$0x3] %v2496_v3  ;;  %2074 = vmatprep.subr.bf16.mxu0 %v2458_v19  ;;  %2346 = vmatprep.subr.bf16.mxu1 %v2459_v20  ;;  %v441_v55 = vpack.c.bf16 %v2704_v50, %v2701_v49 }
  0x1e   : > { %279 = vst [vmem:[#allocation2 + $0x1] sm:$0xff] %v247_v24  ;;  %280 = vst [vmem:[#allocation2 + $0x9] sm:$0xff] %v248_v25 }
  0x1f   : > { %281 = vst [vmem:[#allocation2 + $0x19] sm:$0xff] %v2617_v26  ;;  %282 = vst [vmem:[#allocation2 + $0x21] sm:$0xff] %v2620_v28  ;;  %v2733_v26 = vld [vmem:[%s2603_s10 + $0xd8] sm:$0xff]  ;;  %v2740_v28 = vld [vmem:[%s2603_s10 + $0xe8] sm:$0xff] }
  0x20   : > { %283 = vst [vmem:[#allocation2 + $0x31] sm:$0xff] %v2624_v29  ;;  %284 = vst [vmem:[#allocation2 + $0x39] sm:$0xff] %v2627_v30  ;;  %2075 = vmatpush3.bf16.msra.mxu0 %v2460_v21  ;;  %2347 = vmatpush3.bf16.msra.mxu1 %v2459_v20  ;;  %v2718_v20 = vld [vmem:[%s2603_s10 + $0xc0] sm:$0xff]  ;;  %v2721_v21 = vld [vmem:[%s2603_s10 + $0xc8] sm:$0xff]  ;;  %v450_v30 = vpack.c.bf16 %v2740_v28, %v2737_v27 }
  0x21   : > { %285 = vst [vmem:[#allocation2 + $0x49] sm:$0xff] %v2636_v32  ;;  %286 = vst [vmem:[#allocation2 + $0x51] sm:$0xff] %v2639_v33  ;;  %2076 = vmatprep.subr.bf16.mxu0 %v2461_v22  ;;  %2348 = vmatprep.subr.bf16.mxu1 %v2462_v23  ;;  %v2724_v22 = vld [vmem:[%s2603_s10 + $0xd0] sm:$0xff]  ;;  %v444_v25 = vpack.c.bf16 %v2721_v21, %v2718_v20 }
  0x22   : > { %287 = vst [vmem:[#allocation2 + $0x61] sm:$0xff] %v2642_v34  ;;  %288 = vst [vmem:[#allocation2 + $0x69] sm:$0xff] %v2647_v35  ;;  %v447_v29 = vpack.c.bf16 %v2733_v26, %v2724_v22 }
  0x23   : > { %289 = vst [vmem:[#allocation2 + $0x79] sm:$0xff] %v2651_v36  ;;  %290 = vst [vmem:[#allocation2 + $0x81] sm:$0xff] %v2654_v37 }
  0x24   : > { %291 = vst [vmem:[#allocation2 + $0x91] sm:$0xff] %v2660_v38  ;;  %292 = vst [vmem:[#allocation2 + $0x99] sm:$0xff] %v2663_v39  ;;  %2077 = vmatpush3.bf16.msra.mxu0 %v2463_v31  ;;  %2349 = vmatpush3.bf16.msra.mxu1 %v2462_v23  ;;  %v417_v23 = vpack.c.bf16 %v2639_v33, %v2636_v32  ;;  %v2750_v31 = vld [vmem:[%s2603_s10 + $0xf0] sm:$0xff]  ;;  %v2753_v32 = vld [vmem:[%s2603_s10 + $0xf8] sm:$0xff] }
  0x25   : > { %293 = vst [vmem:[#allocation2 + $0xa9] sm:$0xff] %v2666_v40  ;;  %294 = vst [vmem:[#allocation2 + $0xb1] sm:$0xff] %v2671_v41  ;;  %v375_v51 = vld [vmem:[#allocation2 + $0x2] sm:$0xff]  ;;  %v376_v52 = vld [vmem:[#allocation2 + $0xa] sm:$0xff] }
  0x26   : > { %295 = vst [vmem:[#allocation2 + $0xc1] sm:$0xff] %v2675_v42  ;;  %296 = vst [vmem:[#allocation2 + $0xc9] sm:$0xff] %v2678_v43  ;;  %v311_v53 = vld [vmem:[#allocation2] sm:$0xff]  ;;  %v409_v56 = vpack.c.bf16 %v376_v52, %v375_v51  ;;  %v312_v57 = vld [vmem:[#allocation2 + $0x8] sm:$0xff] }
  0x27   : > { %297 = vst [vmem:[#allocation2 + $0xd9] sm:$0xff] %v2684_v44  ;;  %298 = vst [vmem:[#allocation2 + $0xe1] sm:$0xff] %v2687_v45  ;;  %v377_v58 = vld [vmem:[#allocation2 + $0x1a] sm:$0xff]  ;;  %v378_v59 = vld [vmem:[#allocation2 + $0x22] sm:$0xff]  ;;  %v407_v61 = vpack.c.bf16 %v312_v57, %v311_v53 }
  0x28   : > { %299 = vst [vmem:[#allocation2 + $0xf1] sm:$0xff] %v2690_v46  ;;  %300 = vst [vmem:[#allocation2 + $0xf9] sm:$0xff] %v2697_v48  ;;  %v412_v62 = vpack.c.bf16 %v378_v59, %v377_v58  ;;  %v379_v63 = vld [vmem:[#allocation2 + $0x32] sm:$0xff]  ;;  %2350 = vmatprep.mubr.bf16.mxu1 %v409_v56  ;;  %v380_v0 = vld [vmem:[#allocation2 + $0x3a] sm:$0xff]  ;;  %v453_v56 = vpack.c.bf16 %v2753_v32, %v2750_v31 }
  0x29   : > { %301 = vst [vmem:[#allocation2 + $0x109] sm:$0xff] %v2701_v49  ;;  %302 = vst [vmem:[#allocation2 + $0x111] sm:$0xff] %v2704_v50  ;;  %680 = vmatmul.mubr.bf16.vlgmr.msra.gmra.mrb[0].mxu0 %v407_v61  ;;  %v313_v1 = vld [vmem:[#allocation2 + $0x18] sm:$0xff]  ;;  %v415_v2 = vpack.c.bf16 %v380_v0, %v379_v63  ;;  %v314_v3 = vld [vmem:[#allocation2 + $0x20] sm:$0xff] }
  0x2a   : > { %2351 = vmatmul.mubr.bf16.vlgmr.msra.gmra.mrb[0].mxu1 %v412_v62  ;;  %687 = vmatprep.mubr.bf16.mxu0 %v411_v60  ;;  %v381_v4 = vld [vmem:[#allocation2 + $0x4a] sm:$0xff]  ;;  %v382_v5 = vld [vmem:[#allocation2 + $0x52] sm:$0xff]  ;;  %v383_v6 = vld [vmem:[#allocation2 + $0x62] sm:$0xff]  ;;  %v410_v8 = vpack.c.bf16 %v314_v3, %v313_v1  ;;  %303 = vst [vmem:[#allocation2 + $0x121] sm:$0xff] %v2718_v20 }
  0x2b   : > { %2354 = vmatprep.mubr.bf16.mxu1 %v415_v2  ;;  %v384_v7 = vld [vmem:[#allocation2 + $0x6a] sm:$0xff]  ;;  %v418_v9 = vpack.c.bf16 %v382_v5, %v381_v4  ;;  %v316_v13 = vld [vmem:[#allocation2 + $0x38] sm:$0xff]  ;;  %v386_v15 = vld [vmem:[#allocation2 + $0x82] sm:$0xff]  ;;  %304 = vst [vmem:[#allocation2 + $0x129] sm:$0xff] %v2721_v21  ;;  %v420_v2 = vpack.c.bf16 %v2647_v35, %v2642_v34 }
  0x2c   : > { %v421_v11 = vpack.c.bf16 %v384_v7, %v383_v6  ;;  %v315_v12 = vld [vmem:[#allocation2 + $0x30] sm:$0xff]  ;;  %v385_v14 = vld [vmem:[#allocation2 + $0x7a] sm:$0xff]  ;;  %305 = vst [vmem:[#allocation2 + $0x139] sm:$0xff] %v2724_v22  ;;  %306 = vst [vmem:[#allocation2 + $0x141] sm:$0xff] %v2733_v26 }
  0x2d   : > { %v387_v16 = vld [vmem:[#allocation2 + $0x92] sm:$0xff]  ;;  %v388_v17 = vld [vmem:[#allocation2 + $0x9a] sm:$0xff]  ;;  %v413_v18 = vpack.c.bf16 %v316_v13, %v315_v12  ;;  %v424_v19 = vpack.c.bf16 %v386_v15, %v385_v14  ;;  %307 = vst [vmem:[#allocation2 + $0x151] sm:$0xff] %v2737_v27  ;;  %308 = vst [vmem:[#allocation2 + $0x159] sm:$0xff] %v2740_v28  ;;  %v423_v14 = vpack.c.bf16 %v2654_v37, %v2651_v36 }
  0x2e   : > { %v427_v24 = vpack.c.bf16 %v388_v17, %v387_v16  ;;  %v317_v33 = vld [vmem:[#allocation2 + $0x48] sm:$0xff]  ;;  %v318_v51 = vld [vmem:[#allocation2 + $0x50] sm:$0xff]  ;;  %309 = vst [vmem:[#allocation2 + $0x169] sm:$0xff] %v2750_v31  ;;  %310 = vst [vmem:[#allocation2 + $0x171] sm:$0xff] %v2753_v32 }
  0x2f   : > { %v389_v52 = vld [vmem:[#allocation2 + $0xaa] sm:$0xff]  ;;  %v390_v53 = vld [vmem:[#allocation2 + $0xb2] sm:$0xff]  ;;  %v2464_v57 = vld [vmem:[%s3154_s2 + $0x40] sm:$0xff]   ;;  %v416_v0 = vpack.c.bf16 %v318_v51, %v317_v33 }
  0x30   : > { %v391_v58 = vld [vmem:[#allocation2 + $0xc2] sm:$0xff]  ;;  %v392_v59 = vld [vmem:[#allocation2 + $0xca] sm:$0xff]  ;;  %2198 = vmatprep.subr.bf16.mxu1 %v2464_v57  ;;  %v430_v1 = vpack.c.bf16 %v390_v53, %v389_v52  ;;  %v393_v6 = vld [vmem:[#allocation2 + $0xda] sm:$0xff] }
  0x31   : > { %688 = vmatmul.mubr.bf16.gmra.mrb[4].mxu0 %v410_v8  ;;  %v2465_v60 = vld [vmem:[%s3154_s2] sm:$0xff]   ;;  %v2467_v62 = vld [vmem:[%s3154_s2 + $0x48] sm:$0xff]   ;;  %v433_v3 = vpack.c.bf16 %v392_v59, %v391_v58  ;;  %v395_v8 = vld [vmem:[#allocation2 + $0xf2] sm:$0xff]  ;;  %v426_v59 = vpack.c.bf16 %v2663_v39, %v2660_v38 }
  0x32   : > { %2355 = vmatmul.mubr.bf16.gmra.mrb[4].mxu1 %v418_v9  ;;  %695 = vmatprep.mubr.bf16.mxu0 %v414_v10  ;;  %v2466_v61 = vld [vmem:[%s3154_s2 + $0x80] sm:$0xff]   ;;  %v2468_v63 = vld [vmem:[%s3154_s2 + $0x8] sm:$0xff]   ;;  %v2469_v10 = vld [vmem:[%s3154_s2 + $0x50] sm:$0xff]  }
  0x33   : > { %2358 = vmatprep.mubr.bf16.mxu1 %v421_v11  ;;  %2199 = vmatpush3.bf16.msra.mxu1 %v2465_v60  ;;  %v319_v4 = vld [vmem:[#allocation2 + $0x60] sm:$0xff]  ;;  %v320_v5 = vld [vmem:[#allocation2 + $0x68] sm:$0xff]  ;;  %v2470_v34 = vld [vmem:[%s3154_s2 + $0x10] sm:$0xff]  }
  0x34   : > { %2382 = vmatprep.subr.bf16.mxu0 %v2466_v61  ;;  %2200 = vmatprep.subr.bf16.mxu1 %v2467_v62  ;;  %v394_v7 = vld [vmem:[#allocation2 + $0xe2] sm:$0xff]  ;;  %v396_v9 = vld [vmem:[#allocation2 + $0xfa] sm:$0xff]  ;;  %v419_v11 = vpack.c.bf16 %v320_v5, %v319_v4  ;;  %v400_v36 = vld [vmem:[#allocation2 + $0x12a] sm:$0xff]  ;;  %v429_v5 = vpack.c.bf16 %v2671_v41, %v2666_v40 }
  0x35   : > { %2383 = vmatpush3.bf16.msra.mxu0 %v2466_v61  ;;  %v2471_v35 = vld [vmem:[%s3154_s2 + $0x88] sm:$0xff]   ;;  %v436_v12 = vpack.c.bf16 %v394_v7, %v393_v6  ;;  %v2472_v13 = vld [vmem:[%s3154_s2 + $0x58] sm:$0xff]   ;;  %v439_v15 = vpack.c.bf16 %v396_v9, %v395_v8  ;;  %v2476_v37 = vld [vmem:[%s3154_s2 + $0x90] sm:$0xff]  }
  0x36   : > { %2384 = vmatprep.subr.bf16.mxu0 %v2471_v35  ;;  %v2473_v16 = vld [vmem:[%s3154_s2 + $0x18] sm:$0xff]   ;;  %v399_v33 = vld [vmem:[#allocation2 + $0x122] sm:$0xff]  ;;  %v323_v61 = vld [vmem:[#allocation2 + $0x90] sm:$0xff] }
  0x37   : > { %2201 = vmatpush3.bf16.msra.mxu1 %v2468_v63  ;;  %v321_v17 = vld [vmem:[#allocation2 + $0x78] sm:$0xff]  ;;  %v2475_v51 = vld [vmem:[%s3154_s2 + $0x20] sm:$0xff]   ;;  %v2477_v52 = vld [vmem:[%s3154_s2 + $0x68] sm:$0xff]   ;;  %v445_v60 = vpack.c.bf16 %v400_v36, %v399_v33 }
  0x38   : > { %2202 = vmatprep.subr.bf16.mxu1 %v2469_v10  ;;  %v2478_v58 = vld [vmem:[%s3154_s2 + $0x28] sm:$0xff]   ;;  %v324_v62 = vld [vmem:[#allocation2 + $0x98] sm:$0xff]  ;;  %v326_v6 = vld [vmem:[#allocation2 + $0xb0] sm:$0xff] }
  0x39   : > { %696 = vmatmul.mubr.bf16.gmra.mrb[8].mxu0 %v413_v18  ;;  %v322_v18 = vld [vmem:[#allocation2 + $0x80] sm:$0xff]  ;;  %v325_v39 = vld [vmem:[#allocation2 + $0xa8] sm:$0xff]  ;;  %v406_v8 = vld [vmem:[#allocation2 + $0x172] sm:$0xff] }
  0x3a   : > { %2359 = vmatmul.mubr.bf16.gmra.mrb[8].mxu1 %v424_v19  ;;  %703 = vmatprep.mubr.bf16.mxu0 %v417_v23  ;;  %v397_v19 = vld [vmem:[#allocation2 + $0x10a] sm:$0xff]  ;;  %v398_v23 = vld [vmem:[#allocation2 + $0x112] sm:$0xff]  ;;  %v422_v53 = vpack.c.bf16 %v322_v18, %v321_v17  ;;  %v401_v63 = vld [vmem:[#allocation2 + $0x13a] sm:$0xff]  ;;  %v428_v9 = vpack.c.bf16 %v326_v6, %v325_v39 }
  0x3b   : > { %2362 = vmatprep.mubr.bf16.mxu1 %v427_v24  ;;  %2203 = vmatpush3.bf16.msra.mxu1 %v2470_v34  ;;  %v2474_v24 = vld [vmem:[%s3154_s2 + $0x60] sm:$0xff]   ;;  %v442_v57 = vpack.c.bf16 %v398_v23, %v397_v19  ;;  %v405_v7 = vld [vmem:[#allocation2 + $0x16a] sm:$0xff]  ;;  %v432_v34 = vpack.c.bf16 %v2678_v43, %v2675_v42  ;;  %v329_v41 = vld [vmem:[#allocation2 + $0xd8] sm:$0xff] }
  0x3c   : > { %2385 = vmatpush3.bf16.msra.mxu0 %v2471_v35  ;;  %2204 = vmatprep.subr.bf16.mxu1 %v2472_v13  ;;  %v454_v10 = vpack.c.bf16 %v406_v8, %v405_v7  ;;  %v327_v35 = vld [vmem:[#allocation2 + $0xc0] sm:$0xff]  ;;  %v331_v42 = vld [vmem:[#allocation2 + $0xf0] sm:$0xff]  ;;  %v332_v43 = vld [vmem:[#allocation2 + $0xf8] sm:$0xff] }
  0x3d   : > { %2386 = vmatprep.subr.bf16.mxu0 %v2476_v37  ;;  %v2479_v44 = vld [vmem:[%s3154_s2 + $0x70] sm:$0xff]   ;;  %v335_v46 = vld [vmem:[#allocation2 + $0x120] sm:$0xff]  ;;  %v2481_v50 = vld [vmem:[%s3154_s2 + $0x98] sm:$0xff]  }
  0x3e   : > { %v2480_v48 = vld [vmem:[%s3154_s2 + $0x30] sm:$0xff]   ;;  %v337_v20 = vld [vmem:[#allocation2 + $0x138] sm:$0xff]  ;;  %v338_v21 = vld [vmem:[#allocation2 + $0x140] sm:$0xff] }
  0x3f   : > { %2205 = vmatpush3.bf16.msra.mxu1 %v2473_v16  ;;  %v334_v16 = vld [vmem:[#allocation2 + $0x110] sm:$0xff]  ;;  %v446_v17 = vpack.c.bf16 %v338_v21, %v337_v20  ;;  %v2485_v18 = vld [vmem:[%s3154_s2 + $0xa8] sm:$0xff]   ;;  %v340_v26 = vld [vmem:[#allocation2 + $0x158] sm:$0xff] }
  0x40   : > { %2206 = vmatprep.subr.bf16.mxu1 %v2474_v24  ;;  %2387 = vmatpush3.bf16.msra.mxu0 %v2476_v37  ;;  %v339_v22 = vld [vmem:[#allocation2 + $0x150] sm:$0xff]  ;;  %v2487_v23 = vld [vmem:[%s3154_s2 + $0xb8] sm:$0xff]   ;;  %v341_v27 = vld [vmem:[#allocation2 + $0x168] sm:$0xff] }
  0x41   : > { %704 = vmatmul.mubr.bf16.gmra.mrb[12].mxu0 %v416_v0  ;;  %v402_v0 = vld [vmem:[#allocation2 + $0x142] sm:$0xff]  ;;  %2388 = vmatprep.subr.bf16.mxu0 %v2481_v50  ;;  %v449_v19 = vpack.c.bf16 %v340_v26, %v339_v22  ;;  %v342_v28 = vld [vmem:[#allocation2 + $0x170] sm:$0xff] }
  0x42   : > { %2363 = vmatmul.mubr.bf16.gmra.mrb[12].mxu1 %v430_v1  ;;  %711 = vmatprep.mubr.bf16.mxu0 %v420_v2  ;;  %v403_v1 = vld [vmem:[#allocation2 + $0x152] sm:$0xff]  ;;  %v404_v2 = vld [vmem:[#allocation2 + $0x15a] sm:$0xff]  ;;  %v448_v4 = vpack.c.bf16 %v402_v0, %v401_v63 }
  0x43   : > { %2366 = vmatprep.mubr.bf16.mxu1 %v433_v3  ;;  %2207 = vmatpush3.bf16.msra.mxu1 %v2475_v51  ;;  %v425_v3 = vpack.c.bf16 %v324_v62, %v323_v61  ;;  %v451_v38 = vpack.c.bf16 %v404_v2, %v403_v1 }
  0x44   : > { %2208 = vmatprep.subr.bf16.mxu1 %v2477_v52  ;;  %2389 = vmatpush3.bf16.msra.mxu0 %v2481_v50 }
  0x47   : > { %2209 = vmatpush3.bf16.msra.mxu1 %v2478_v58 }
  0x48   : > { %2210 = vmatprep.subr.bf16.mxu1 %v2479_v44 }
  0x49   : > { %712 = vmatmul.mubr.bf16.gmra.mrb[16].mxu0 %v419_v11  ;;  %v328_v11 = vld [vmem:[#allocation2 + $0xc8] sm:$0xff] }
  0x4a   : > { %2367 = vmatmul.mubr.bf16.gmra.mrb[16].mxu1 %v436_v12  ;;  %719 = vmatprep.mubr.bf16.mxu0 %v423_v14  ;;  %v431_v40 = vpack.c.bf16 %v328_v11, %v327_v35  ;;  %v330_v12 = vld [vmem:[#allocation2 + $0xe0] sm:$0xff]  ;;  %v437_v14 = vpack.c.bf16 %v332_v43, %v331_v42 }
  0x4b   : > { %2370 = vmatprep.mubr.bf16.mxu1 %v439_v15  ;;  %v434_v13 = vpack.c.bf16 %v330_v12, %v329_v41  ;;  %v333_v15 = vld [vmem:[#allocation2 + $0x108] sm:$0xff]  ;;  %2211 = vmatpush3.bf16.msra.mxu1 %v2480_v48 }
  0x4c   : > { %v440_v45 = vpack.c.bf16 %v334_v16, %v333_v15 }
  0x51   : > { %720 = vmatmul.mubr.bf16.gmra.mrb[20].mxu0 %v422_v53 }
  0x52   : > { %2371 = vmatmul.mubr.bf16.gmra.mrb[20].mxu1 %v442_v57  ;;  %727 = vmatprep.mubr.bf16.mxu0 %v426_v59  ;;  %v2865_v57 = vld [vmem:[%s3155_s3] ss:$0 sm:$0xff]  ;;  %v2870_v59 = vld [vmem:[%s3155_s3 + $0x1] ss:$0 sm:$0xff] }
  0x53   : > { %2374 = vmatprep.mubr.bf16.mxu1 %v445_v60 }
  0x59   : > { %728 = vmatmul.mubr.bf16.gmra.mrb[24].mxu0 %v425_v3 }
  0x5a   : > { %2375 = vmatmul.mubr.bf16.gmra.mrb[24].mxu1 %v448_v4  ;;  %735 = vmatprep.mubr.bf16.mxu0 %v429_v5 }
  0x5b   : > { %2378 = vmatprep.mubr.bf16.mxu1 %v451_v38 }
  0x61   : > { %736 = vmatmul.mubr.bf16.gmra.mrb[28].mxu0 %v428_v9 }
  0x62   : > { %2379 = vmatmul.mubr.bf16.gmra.mrb[28].mxu1 %v454_v10  ;;  %743 = vmatprep.mubr.bf16.mxu0 %v432_v34 }
  0x69   : > { %744 = vmatmul.mubr.bf16.gmra.mrb[32].mxu0 %v431_v40 }
  0x6a   : > { %751 = vmatprep.mubr.bf16.mxu0 %v435_v47  ;;  %v336_v47 = vld [vmem:[#allocation2 + $0x128] sm:$0xff] }
  0x6b   : > { %v443_v49 = vpack.c.bf16 %v336_v47, %v335_v46 }
  0x71   : > { %752 = vmatmul.mubr.bf16.gmra.mrb[36].mxu0 %v434_v13 }
  0x72   : > { %759 = vmatprep.mubr.bf16.mxu0 %v438_v54  ;;  %v2482_v54 = vld [vmem:[%s3154_s2 + $0x78] sm:$0xff]  }
  0x73   : > { %2212 = vmatprep.subr.bf16.mxu1 %v2482_v54 }
  0x79   : > { %760 = vmatmul.mubr.bf16.gmra.mrb[40].mxu0 %v437_v14  ;;  %v2497_v14 = vmov 0.0|0.0  }
  0x7a   : > { %767 = vmatprep.mubr.bf16.mxu0 %v441_v55  ;;  %v2483_v55 = vld [vmem:[%s3154_s2 + $0x38] sm:$0xff]  }
  0x7b   : > { %2213 = vmatpush3.bf16.msra.mxu1 %v2483_v55 }
  0x81   : > { %768 = vmatmul.mubr.bf16.gmra.mrb[44].mxu0 %v440_v45 }
  0x82   : > { %775 = vmatprep.mubr.bf16.mxu0 %v444_v25  ;;  %v2484_v25 = vld [vmem:[%s3154_s2 + $0xa0] sm:$0xff]  }
  0x83   : > { %2390 = vmatprep.subr.bf16.mxu0 %v2484_v25 }
  0x84   : > { %2391 = vmatpush3.bf16.msra.mxu0 %v2484_v25 }
  0x85   : > { %2392 = vmatprep.subr.bf16.mxu0 %v2485_v18 }
  0x88   : > { %2393 = vmatpush3.bf16.msra.mxu0 %v2485_v18 }
  0x89   : > { %776 = vmatmul.mubr.bf16.gmra.mrb[48].mxu0 %v443_v49 }
  0x8a   : > { %783 = vmatprep.mubr.bf16.mxu0 %v447_v29  ;;  %v2486_v29 = vld [vmem:[%s3154_s2 + $0xb0] sm:$0xff]  }
  0x8b   : > { %2394 = vmatprep.subr.bf16.mxu0 %v2486_v29 }
  0x8c   : > { %2395 = vmatpush3.bf16.msra.mxu0 %v2486_v29 }
  0x8d   : > { %2396 = vmatprep.subr.bf16.mxu0 %v2487_v23 }
  0x90   : > { %2397 = vmatpush3.bf16.msra.mxu0 %v2487_v23 }
  0x91   : > { %784 = vmatmul.mubr.bf16.gmra.mrb[52].mxu0 %v446_v17 }
  0x92   : > { %791 = vmatprep.mubr.bf16.mxu0 %v450_v30  ;;  %v452_v30 = vpack.c.bf16 %v342_v28, %v341_v27 }
  0x99   : > { %792 = vmatmul.mubr.bf16.gmra.mrb[56].mxu0 %v449_v19 }
  0x9a   : > { %799 = vmatprep.mubr.bf16.mxu0 %v453_v56 }
  0xa1   : > { %800 = vmatmul.mubr.bf16.gmra.mrb[60].mxu0 %v452_v30 }
  0xfc   : > { %v2078_v24 = vpop.f32.mrb[0].mxu0 }
  0xfd   : > { %v2352_v33 = vpop.f32.mrb[0].mxu1  ;;  %v2079_v36 = vpop.f32.mrb[1].mxu0 }
  0xfe   : > { %v842_v37 = vpop.f32.mrb[1].mxu1  ;;  %v2080_v51 = vadd.f32 %v2079_v36, %v2078_v24  ;;  %v2081_v52 = vpop.f32.mrb[2].mxu0 }
  0xff   : > { %v2353_v53 = vpop.f32.mrb[2].mxu1  ;;  %v2082_v58 = vpop.f32.mrb[3].mxu0 }
 0x100   : > { %v845_v31 = vpop.f32.mrb[3].mxu1  ;;  %v843_v32 = vadd.f32 %v2080_v51, %v842_v37  ;;  %v2083_v56 = vadd.f32 %v2082_v58, %v2081_v52 }
 0x102   : > { %v974_v60 = vmul.f32 %v2865_v57, %v843_v32  ;;  %v846_v61 = vadd.f32 %v2083_v56, %v845_v31 }
 0x104   : > { %v1011_v62 = vadd.f32 %v2870_v59, %v974_v60  ;;  %v975_v63 = vmul.f32 %v2865_v57, %v846_v61  ;;  %v2084_v0 = vpop.f32.mrb[4].mxu0 }
 0x105   : > { %v2356_v1 = vpop.f32.mrb[4].mxu1  ;;  %v2085_v2 = vpop.f32.mrb[5].mxu0 }
 0x106   : > { %v858_v3 = vpop.f32.mrb[5].mxu1  ;;  %v1012_v4 = vadd.f32 %v2870_v59, %v975_v63  ;;  %v2086_v5 = vadd.f32 %v2085_v2, %v2084_v0  ;;  %v2087_v38 = vpop.f32.mrb[6].mxu0  ;;  %v1043_v8 = vmax.f32 %v1011_v62, 0.0 }
 0x107   : > { %v2357_v39 = vpop.f32.mrb[6].mxu1  ;;  %v2088_v6 = vpop.f32.mrb[7].mxu0 }
 0x108   : > { %v861_v7 = vpop.f32.mrb[7].mxu1  ;;  %v1044_v9 = vmax.f32 %v1012_v4, 0.0  ;;  %v851_v10 = vadd.f32 %v2352_v33, %v2086_v5  ;;  %v2089_v34 = vadd.f32 %v2088_v6, %v2087_v38 }
 0x10a   : > { %v976_v35 = vmul.f32 %v2865_v57, %v851_v10  ;;  %v854_v11 = vadd.f32 %v2353_v53, %v2089_v34  ;;  %v1242_v40 = vpack.c.bf16 %v1044_v9, %v1043_v8 }
 0x10c   : > { %v977_v41 = vmul.f32 %v2865_v57, %v854_v11  ;;  %v2090_v12 = vpop.f32.mrb[8].mxu0  ;;  %1513 = vmatprep.mubr.bf16.mxu1 %v1242_v40  ;;  %v1013_v13 = vadd.f32 %v2870_v59, %v976_v35 }
 0x10d   : > { %v2879_v42 = vpop.f32.mrb[8].mxu1  ;;  %v2091_v43 = vpop.f32.mrb[9].mxu0  ;;  %1514 = vmatmul.mubr.bf16.vlgmr.msra.gmra.mrb[32].mxu1 %v2497_v14 }
 0x10e   : > { %v874_v15 = vpop.f32.mrb[9].mxu1  ;;  %v2092_v16 = vadd.f32 %v2091_v43, %v2090_v12  ;;  %v2093_v44 = vpop.f32.mrb[10].mxu0  ;;  %v1014_v45 = vadd.f32 %v2870_v59, %v977_v41  ;;  %v1045_v54 = vmax.f32 %v1013_v13, 0.0 }
 0x10f   : > { %v2883_v46 = vpop.f32.mrb[10].mxu1  ;;  %v2094_v47 = vpop.f32.mrb[11].mxu0 }
 0x110   : > { %v877_v48 = vpop.f32.mrb[11].mxu1  ;;  %v859_v49 = vadd.f32 %v2092_v16, %v858_v3  ;;  %v2095_v50 = vadd.f32 %v2094_v47, %v2093_v44  ;;  %v1046_v55 = vmax.f32 %v1014_v45, 0.0 }
 0x112   : > { %v978_v20 = vmul.f32 %v2865_v57, %v859_v49  ;;  %v862_v21 = vadd.f32 %v2095_v50, %v861_v7  ;;  %v1243_v25 = vpack.c.bf16 %v1046_v55, %v1045_v54 }
 0x114   : > { %v979_v17 = vmul.f32 %v2865_v57, %v862_v21  ;;  %v2096_v18 = vpop.f32.mrb[12].mxu0  ;;  %1521 = vmatprep.mubr.bf16.mxu1 %v1243_v25  ;;  %2398 = vmatprep.mubr.bf16.mxu0 %v1243_v25  ;;  %v1015_v22 = vadd.f32 %v2870_v59, %v978_v20 }
 0x115   : > { %v2888_v26 = vpop.f32.mrb[12].mxu1  ;;  %v2097_v29 = vpop.f32.mrb[13].mxu0  ;;  %1522 = vmatmul.mubr.bf16.gmra.mrb[36].mxu1 %v1242_v40 }
 0x116   : > { %v2890_v19 = vpop.f32.mrb[13].mxu1  ;;  %v2098_v23 = vadd.f32 %v2097_v29, %v2096_v18  ;;  %v2099_v27 = vpop.f32.mrb[14].mxu0  ;;  %v1016_v28 = vadd.f32 %v2870_v59, %v979_v17  ;;  %v1047_v51 = vmax.f32 %v1015_v22, 0.0 }
 0x117   : > { %v2893_v30 = vpop.f32.mrb[14].mxu1  ;;  %v2100_v24 = vpop.f32.mrb[15].mxu0 }
 0x118   : > { %v2895_v33 = vpop.f32.mrb[15].mxu1  ;;  %v867_v36 = vadd.f32 %v2356_v1, %v2098_v23  ;;  %v2101_v37 = vadd.f32 %v2100_v24, %v2099_v27  ;;  %v1048_v52 = vmax.f32 %v1016_v28, 0.0 }
 0x11a   : > { %v980_v53 = vmul.f32 %v2865_v57, %v867_v36  ;;  %v870_v58 = vadd.f32 %v2357_v39, %v2101_v37  ;;  %v1246_v31 = vpack.c.bf16 %v1048_v52, %v1047_v51 }
 0x11c   : > { %v981_v32 = vmul.f32 %v2865_v57, %v870_v58  ;;  %v2102_v56 = vpop.f32.mrb[16].mxu0  ;;  %1529 = vmatprep.mubr.bf16.mxu1 %v1246_v31  ;;  %2399 = vmatmul.mubr.bf16.vlgmr.msra.gmra.mrb[64].mxu0 %v1246_v31  ;;  %v1017_v60 = vadd.f32 %v2870_v59, %v980_v53 }
 0x11d   : > { %v2900_v61 = vpop.f32.mrb[16].mxu1  ;;  %v2103_v62 = vpop.f32.mrb[17].mxu0  ;;  %1530 = vmatmul.mubr.bf16.gmra.mrb[40].mxu1 %v1243_v25 }
 0x11e   : > { %v2902_v63 = vpop.f32.mrb[17].mxu1  ;;  %v2104_v0 = vadd.f32 %v2103_v62, %v2102_v56  ;;  %v2105_v1 = vpop.f32.mrb[18].mxu0  ;;  %v1018_v2 = vadd.f32 %v2870_v59, %v981_v32  ;;  %v1049_v6 = vmax.f32 %v1017_v60, 0.0 }
 0x11f   : > { %v2905_v3 = vpop.f32.mrb[18].mxu1  ;;  %v2106_v4 = vpop.f32.mrb[19].mxu0 }
 0x120   : > { %v2907_v5 = vpop.f32.mrb[19].mxu1  ;;  %v875_v38 = vadd.f32 %v2104_v0, %v874_v15  ;;  %v2107_v39 = vadd.f32 %v2106_v4, %v2105_v1  ;;  %v1050_v7 = vmax.f32 %v1018_v2, 0.0 }
 0x122   : > { %v982_v8 = vmul.f32 %v2865_v57, %v875_v38  ;;  %v878_v9 = vadd.f32 %v2107_v39, %v877_v48  ;;  %v1249_v10 = vpack.c.bf16 %v1050_v7, %v1049_v6 }
 0x124   : > { %v983_v34 = vmul.f32 %v2865_v57, %v878_v9  ;;  %v2108_v35 = vpop.f32.mrb[20].mxu0  ;;  %1537 = vmatprep.mubr.bf16.mxu1 %v1249_v10  ;;  %2402 = vmatprep.mubr.bf16.mxu0 %v1249_v10  ;;  %v1019_v11 = vadd.f32 %v2870_v59, %v982_v8 }
 0x125   : > { %v2912_v40 = vpop.f32.mrb[20].mxu1  ;;  %v2109_v41 = vpop.f32.mrb[21].mxu0  ;;  %1538 = vmatmul.mubr.bf16.gmra.mrb[44].mxu1 %v1246_v31 }
 0x126   : > { %v2914_v12 = vpop.f32.mrb[21].mxu1  ;;  %v2110_v13 = vadd.f32 %v2109_v41, %v2108_v35  ;;  %v2111_v43 = vpop.f32.mrb[22].mxu0  ;;  %v1020_v15 = vadd.f32 %v2870_v59, %v983_v34  ;;  %v1051_v49 = vmax.f32 %v1019_v11, 0.0 }
 0x127   : > { %v2917_v16 = vpop.f32.mrb[22].mxu1  ;;  %v2112_v44 = vpop.f32.mrb[23].mxu0 }
 0x128   : > { %v2919_v45 = vpop.f32.mrb[23].mxu1  ;;  %v883_v47 = vadd.f32 %v2879_v42, %v2110_v13  ;;  %v2113_v48 = vadd.f32 %v2112_v44, %v2111_v43  ;;  %v1052_v50 = vmax.f32 %v1020_v15, 0.0 }
 0x12a   : > { %v984_v54 = vmul.f32 %v2865_v57, %v883_v47  ;;  %v886_v55 = vadd.f32 %v2883_v46, %v2113_v48  ;;  %v1252_v20 = vpack.c.bf16 %v1052_v50, %v1051_v49 }
 0x12c   : > { %v985_v21 = vmul.f32 %v2865_v57, %v886_v55  ;;  %v2114_v25 = vpop.f32.mrb[24].mxu0  ;;  %1545 = vmatprep.mubr.bf16.mxu1 %v1252_v20  ;;  %2403 = vmatmul.mubr.bf16.gmra.mrb[68].mxu0 %v1252_v20  ;;  %v1021_v17 = vadd.f32 %v2870_v59, %v984_v54 }
 0x12d   : > { %v2926_v18 = vpop.f32.mrb[24].mxu1  ;;  %v2115_v22 = vpop.f32.mrb[25].mxu0  ;;  %1546 = vmatmul.mubr.bf16.gmra.mrb[48].mxu1 %v1249_v10 }
 0x12e   : > { %v2928_v42 = vpop.f32.mrb[25].mxu1  ;;  %v2116_v29 = vadd.f32 %v2115_v22, %v2114_v25  ;;  %v2117_v23 = vpop.f32.mrb[26].mxu0  ;;  %v1022_v27 = vadd.f32 %v2870_v59, %v985_v21  ;;  %v1053_v51 = vmax.f32 %v1021_v17, 0.0 }
 0x12f   : > { %v2931_v28 = vpop.f32.mrb[26].mxu1  ;;  %v2118_v46 = vpop.f32.mrb[27].mxu0 }
 0x130   : > { %v2933_v24 = vpop.f32.mrb[27].mxu1  ;;  %v891_v36 = vadd.f32 %v2116_v29, %v2890_v19  ;;  %v2119_v37 = vadd.f32 %v2118_v46, %v2117_v23  ;;  %v1054_v52 = vmax.f32 %v1022_v27, 0.0 }
 0x132   : > { %v986_v53 = vmul.f32 %v2865_v57, %v891_v36  ;;  %v894_v58 = vadd.f32 %v2119_v37, %v2895_v33  ;;  %v1255_v31 = vpack.c.bf16 %v1054_v52, %v1053_v51 }
 0x134   : > { %v987_v32 = vmul.f32 %v2865_v57, %v894_v58  ;;  %v2120_v56 = vpop.f32.mrb[28].mxu0  ;;  %1553 = vmatprep.mubr.bf16.mxu1 %v1255_v31  ;;  %2406 = vmatprep.mubr.bf16.mxu0 %v1255_v31  ;;  %v1023_v60 = vadd.f32 %v2870_v59, %v986_v53 }
 0x135   : > { %v2940_v62 = vpop.f32.mrb[28].mxu1  ;;  %v2121_v0 = vpop.f32.mrb[29].mxu0  ;;  %1554 = vmatmul.mubr.bf16.gmra.mrb[52].mxu1 %v1252_v20 }
 0x136   : > { %v2942_v19 = vpop.f32.mrb[29].mxu1  ;;  %v2122_v1 = vadd.f32 %v2121_v0, %v2120_v56  ;;  %v2123_v2 = vpop.f32.mrb[30].mxu0  ;;  %v1024_v4 = vadd.f32 %v2870_v59, %v987_v32  ;;  %v1055_v8 = vmax.f32 %v1023_v60, 0.0 }
 0x137   : > { %v2945_v38 = vpop.f32.mrb[30].mxu1  ;;  %v2124_v33 = vpop.f32.mrb[31].mxu0 }
 0x138   : > { %v2947_v39 = vpop.f32.mrb[31].mxu1  ;;  %v899_v6 = vadd.f32 %v2888_v26, %v2122_v1  ;;  %v2125_v7 = vadd.f32 %v2124_v33, %v2123_v2  ;;  %v1056_v9 = vmax.f32 %v1024_v4, 0.0 }
 0x13a   : > { %v988_v10 = vmul.f32 %v2865_v57, %v899_v6  ;;  %v902_v34 = vadd.f32 %v2893_v30, %v2125_v7  ;;  %v1258_v35 = vpack.c.bf16 %v1056_v9, %v1055_v8 }
 0x13c   : > { %v989_v11 = vmul.f32 %v2865_v57, %v902_v34  ;;  %v2126_v41 = vpop.f32.mrb[32].mxu0  ;;  %1561 = vmatprep.mubr.bf16.mxu1 %v1258_v35  ;;  %2407 = vmatmul.mubr.bf16.gmra.mrb[72].mxu0 %v1258_v35  ;;  %v1025_v13 = vadd.f32 %v2870_v59, %v988_v10 }
 0x13d   : > { %v2127_v43 = vpop.f32.mrb[33].mxu0  ;;  %1562 = vmatmul.mubr.bf16.gmra.mrb[56].mxu1 %v1255_v31 }
 0x13e   : > { %v2128_v15 = vadd.f32 %v2127_v43, %v2126_v41  ;;  %v2129_v44 = vpop.f32.mrb[34].mxu0  ;;  %v1026_v26 = vadd.f32 %v2870_v59, %v989_v11  ;;  %v1057_v50 = vmax.f32 %v1025_v13, 0.0 }
 0x13f   : > { %v2130_v47 = vpop.f32.mrb[35].mxu0 }
 0x140   : > { %v907_v48 = vadd.f32 %v2128_v15, %v2902_v63  ;;  %v2131_v49 = vadd.f32 %v2130_v47, %v2129_v44  ;;  %v1058_v30 = vmax.f32 %v1026_v26, 0.0 }
 0x142   : > { %v990_v54 = vmul.f32 %v2865_v57, %v907_v48  ;;  %v910_v55 = vadd.f32 %v2131_v49, %v2907_v5  ;;  %v1261_v20 = vpack.c.bf16 %v1058_v30, %v1057_v50 }
 0x144   : > { %v991_v21 = vmul.f32 %v2865_v57, %v910_v55  ;;  %v2132_v25 = vpop.f32.mrb[36].mxu0  ;;  %1569 = vmatprep.mubr.bf16.mxu1 %v1261_v20  ;;  %2410 = vmatprep.mubr.bf16.mxu0 %v1261_v20  ;;  %v1027_v17 = vadd.f32 %v2870_v59, %v990_v54 }
 0x145   : > { %v2133_v22 = vpop.f32.mrb[37].mxu0  ;;  %1570 = vmatmul.mubr.bf16.gmra.mrb[60].mxu1 %v1258_v35 }
 0x146   : > { %v2134_v29 = vadd.f32 %v2133_v22, %v2132_v25  ;;  %v2135_v23 = vpop.f32.mrb[38].mxu0  ;;  %v1028_v63 = vadd.f32 %v2870_v59, %v991_v21  ;;  %v1059_v37 = vmax.f32 %v1027_v17, 0.0 }
 0x147   : > { %v2136_v27 = vpop.f32.mrb[39].mxu0 }
 0x148   : > { %v915_v46 = vadd.f32 %v2900_v61, %v2134_v29  ;;  %v2137_v36 = vadd.f32 %v2136_v27, %v2135_v23  ;;  %v1060_v5 = vmax.f32 %v1028_v63, 0.0 }
 0x14a   : > { %v992_v51 = vmul.f32 %v2865_v57, %v915_v46  ;;  %v918_v52 = vadd.f32 %v2905_v3, %v2137_v36  ;;  %v1264_v53 = vpack.c.bf16 %v1060_v5, %v1059_v37 }
 0x14c   : > { %v993_v58 = vmul.f32 %v2865_v57, %v918_v52  ;;  %v2138_v31 = vpop.f32.mrb[40].mxu0  ;;  %1577 = vmatprep.mubr.bf16.mxu1 %v1264_v53  ;;  %2411 = vmatmul.mubr.bf16.gmra.mrb[76].mxu0 %v1264_v53  ;;  %v1029_v32 = vadd.f32 %v2870_v59, %v992_v51 }
 0x14d   : > { %v2139_v56 = vpop.f32.mrb[41].mxu0  ;;  %1578 = vmatmul.mubr.bf16.gmra.mrb[64].mxu1 %v1261_v20 }
 0x14e   : > { %v2140_v60 = vadd.f32 %v2139_v56, %v2138_v31  ;;  %v2141_v0 = vpop.f32.mrb[42].mxu0  ;;  %v1030_v61 = vadd.f32 %v2870_v59, %v993_v58  ;;  %v1061_v33 = vmax.f32 %v1029_v32, 0.0 }
 0x14f   : > { %v2142_v1 = vpop.f32.mrb[43].mxu0 }
 0x150   : > { %v923_v2 = vadd.f32 %v2140_v60, %v2914_v12  ;;  %v2143_v4 = vadd.f32 %v2142_v1, %v2141_v0  ;;  %v1062_v3 = vmax.f32 %v1030_v61, 0.0 }
 0x152   : > { %v994_v6 = vmul.f32 %v2865_v57, %v923_v2  ;;  %v926_v7 = vadd.f32 %v2143_v4, %v2919_v45  ;;  %v1267_v8 = vpack.c.bf16 %v1062_v3, %v1061_v33 }
 0x154   : > { %v995_v9 = vmul.f32 %v2865_v57, %v926_v7  ;;  %v2144_v10 = vpop.f32.mrb[44].mxu0  ;;  %1585 = vmatprep.mubr.bf16.mxu1 %v1267_v8  ;;  %2414 = vmatprep.mubr.bf16.mxu0 %v1267_v8  ;;  %v1031_v34 = vadd.f32 %v2870_v59, %v994_v6 }
 0x155   : > { %v2145_v35 = vpop.f32.mrb[45].mxu0  ;;  %1586 = vmatmul.mubr.bf16.gmra.mrb[68].mxu1 %v1264_v53 }
 0x156   : > { %v2146_v11 = vadd.f32 %v2145_v35, %v2144_v10  ;;  %v2147_v41 = vpop.f32.mrb[46].mxu0  ;;  %v1032_v12 = vadd.f32 %v2870_v59, %v995_v9  ;;  %v1063_v44 = vmax.f32 %v1031_v34, 0.0 }
 0x157   : > { %v2148_v13 = vpop.f32.mrb[47].mxu0 }
 0x158   : > { %v931_v43 = vadd.f32 %v2912_v40, %v2146_v11  ;;  %v2149_v15 = vadd.f32 %v2148_v13, %v2147_v41  ;;  %v1064_v45 = vmax.f32 %v1032_v12, 0.0 }
 0x15a   : > { %v996_v26 = vmul.f32 %v2865_v57, %v931_v43  ;;  %v934_v47 = vadd.f32 %v2917_v16, %v2149_v15  ;;  %v1270_v48 = vpack.c.bf16 %v1064_v45, %v1063_v44 }
 0x15c   : > { %v997_v49 = vmul.f32 %v2865_v57, %v934_v47  ;;  %v2150_v50 = vpop.f32.mrb[48].mxu0  ;;  %1593 = vmatprep.mubr.bf16.mxu1 %v1270_v48  ;;  %2415 = vmatmul.mubr.bf16.gmra.mrb[80].mxu0 %v1270_v48  ;;  %v1033_v30 = vadd.f32 %v2870_v59, %v996_v26 }
 0x15d   : > { %v2151_v54 = vpop.f32.mrb[49].mxu0  ;;  %1594 = vmatmul.mubr.bf16.gmra.mrb[72].mxu1 %v1267_v8 }
 0x15e   : > { %v2152_v55 = vadd.f32 %v2151_v54, %v2150_v50  ;;  %v2153_v20 = vpop.f32.mrb[50].mxu0  ;;  %v1034_v40 = vadd.f32 %v2870_v59, %v997_v49  ;;  %v1065_v22 = vmax.f32 %v1033_v30, 0.0 }
 0x15f   : > { %v2154_v21 = vpop.f32.mrb[51].mxu0 }
 0x160   : > { %v939_v25 = vadd.f32 %v2152_v55, %v2928_v42  ;;  %v2155_v17 = vadd.f32 %v2154_v21, %v2153_v20  ;;  %v1066_v16 = vmax.f32 %v1034_v40, 0.0 }
 0x162   : > { %v998_v29 = vmul.f32 %v2865_v57, %v939_v25  ;;  %v942_v23 = vadd.f32 %v2155_v17, %v2933_v24  ;;  %v1273_v63 = vpack.c.bf16 %v1066_v16, %v1065_v22 }
 0x164   : > { %v999_v27 = vmul.f32 %v2865_v57, %v942_v23  ;;  %v2156_v46 = vpop.f32.mrb[52].mxu0  ;;  %1601 = vmatprep.mubr.bf16.mxu1 %v1273_v63  ;;  %2418 = vmatprep.mubr.bf16.mxu0 %v1273_v63  ;;  %v1035_v36 = vadd.f32 %v2870_v59, %v998_v29 }
 0x165   : > { %v2157_v37 = vpop.f32.mrb[53].mxu0  ;;  %1602 = vmatmul.mubr.bf16.gmra.mrb[76].mxu1 %v1270_v48 }
 0x166   : > { %v2158_v5 = vadd.f32 %v2157_v37, %v2156_v46  ;;  %v2159_v51 = vpop.f32.mrb[54].mxu0  ;;  %v1036_v42 = vadd.f32 %v2870_v59, %v999_v27  ;;  %v1067_v31 = vmax.f32 %v1035_v36, 0.0  ;;  %v3007_v46 = vld [vmem:[%s3155_s3 + $0x2] ss:$0 sm:$0xff] }
 0x167   : > { %v2160_v52 = vpop.f32.mrb[55].mxu0 }
 0x168   : > { %v947_v53 = vadd.f32 %v2926_v18, %v2158_v5  ;;  %v2161_v58 = vadd.f32 %v2160_v52, %v2159_v51  ;;  %v1068_v24 = vmax.f32 %v1036_v42, 0.0  ;;  %v3012_v5 = vld [vmem:[%s3155_s3 + $0x3] ss:$0 sm:$0xff] }
 0x16a   : > { %v1000_v32 = vmul.f32 %v2865_v57, %v947_v53  ;;  %v950_v56 = vadd.f32 %v2931_v28, %v2161_v58  ;;  %v1276_v60 = vpack.c.bf16 %v1068_v24, %v1067_v31 }
 0x16c   : > { %v1001_v0 = vmul.f32 %v2865_v57, %v950_v56  ;;  %v2162_v61 = vpop.f32.mrb[56].mxu0  ;;  %1609 = vmatprep.mubr.bf16.mxu1 %v1276_v60  ;;  %2419 = vmatmul.mubr.bf16.gmra.mrb[84].mxu0 %v1276_v60  ;;  %v1037_v1 = vadd.f32 %v2870_v59, %v1000_v32 }
 0x16d   : > { %v2163_v2 = vpop.f32.mrb[57].mxu0  ;;  %1610 = vmatmul.mubr.bf16.gmra.mrb[80].mxu1 %v1273_v63 }
 0x16e   : > { %v2164_v4 = vadd.f32 %v2163_v2, %v2162_v61  ;;  %v2165_v33 = vpop.f32.mrb[58].mxu0  ;;  %v1038_v18 = vadd.f32 %v2870_v59, %v1001_v0  ;;  %v1069_v8 = vmax.f32 %v1037_v1, 0.0 }
 0x16f   : > { %v2166_v3 = vpop.f32.mrb[59].mxu0 }
 0x170   : > { %v955_v6 = vadd.f32 %v2164_v4, %v2942_v19  ;;  %v2167_v7 = vadd.f32 %v2166_v3, %v2165_v33  ;;  %v1070_v28 = vmax.f32 %v1038_v18, 0.0 }
 0x172   : > { %v1002_v9 = vmul.f32 %v2865_v57, %v955_v6  ;;  %v958_v10 = vadd.f32 %v2167_v7, %v2947_v39  ;;  %v1279_v34 = vpack.c.bf16 %v1070_v28, %v1069_v8 }
 0x174   : > { %v1003_v35 = vmul.f32 %v2865_v57, %v958_v10  ;;  %v2168_v11 = vpop.f32.mrb[60].mxu0  ;;  %1617 = vmatprep.mubr.bf16.mxu1 %v1279_v34  ;;  %2422 = vmatprep.mubr.bf16.mxu0 %v1279_v34  ;;  %v1039_v41 = vadd.f32 %v2870_v59, %v1002_v9 }
 0x175   : > { %v2169_v12 = vpop.f32.mrb[61].mxu0  ;;  %1618 = vmatmul.mubr.bf16.gmra.mrb[84].mxu1 %v1276_v60 }
 0x176   : > { %v2170_v13 = vadd.f32 %v2169_v12, %v2168_v11  ;;  %v2171_v43 = vpop.f32.mrb[62].mxu0  ;;  %v1040_v19 = vadd.f32 %v2870_v59, %v1003_v35  ;;  %v1071_v26 = vmax.f32 %v1039_v41, 0.0 }
 0x177   : > { %v2172_v15 = vpop.f32.mrb[63].mxu0 }
 0x178   : > { %v963_v44 = vadd.f32 %v2940_v62, %v2170_v13  ;;  %v2173_v45 = vadd.f32 %v2172_v15, %v2171_v43  ;;  %v1072_v39 = vmax.f32 %v1040_v19, 0.0 }
 0x17a   : > { %v1004_v47 = vmul.f32 %v2865_v57, %v963_v44  ;;  %v966_v48 = vadd.f32 %v2945_v38, %v2173_v45  ;;  %v1282_v49 = vpack.c.bf16 %v1072_v39, %v1071_v26 }
 0x17c   : > { %v1005_v50 = vmul.f32 %v2865_v57, %v966_v48  ;;  %1625 = vmatprep.mubr.bf16.mxu1 %v1282_v49  ;;  %2423 = vmatmul.mubr.bf16.gmra.mrb[88].mxu0 %v1282_v49  ;;  %v1041_v30 = vadd.f32 %v2870_v59, %v1004_v47 }
 0x17d   : > { %1626 = vmatmul.mubr.bf16.gmra.mrb[88].mxu1 %v1279_v34 }
 0x17e   : > { %v1042_v54 = vadd.f32 %v2870_v59, %v1005_v50  ;;  %v1073_v55 = vmax.f32 %v1041_v30, 0.0 }
 0x180   : > { %v1074_v20 = vmax.f32 %v1042_v54, 0.0 }
 0x182   : > { %v1285_v62 = vpack.c.bf16 %v1074_v20, %v1073_v55 }
 0x184   : > { %1633 = vmatprep.mubr.bf16.mxu1 %v1285_v62  ;;  %2426 = vmatprep.mubr.bf16.mxu0 %v1285_v62 }
 0x185   : > { %1634 = vmatmul.mubr.bf16.gmra.mrb[92].mxu1 %v1282_v49  ;;  %2427 = vmatmul.mubr.bf16.gmra.mrb[92].mxu0 %v2497_v14 }
 0x1e0   : > { %v2214_v40 = vpop.f32.mrb[32].mxu1 }
 0x1e1   : > { %v2215_v38 = vpop.f32.mrb[33].mxu1 }
 0x1e2   : > { %v2216_v21 = vadd.f32 %v2215_v38, %v2214_v40  ;;  %v2217_v25 = vpop.f32.mrb[34].mxu1 }
 0x1e3   : > { %v2218_v57 = vpop.f32.mrb[35].mxu1 }
 0x1e4   : > { %v2219_v17 = vadd.f32 %v2218_v57, %v2217_v25 }
 0x1e8   : > { %v2220_v22 = vpop.f32.mrb[36].mxu1 }
 0x1e9   : > { %v2221_v16 = vpop.f32.mrb[37].mxu1 }
 0x1ea   : > { %v2222_v29 = vadd.f32 %v2221_v16, %v2220_v22  ;;  %v2223_v23 = vpop.f32.mrb[38].mxu1 }
 0x1eb   : > { %v2224_v63 = vpop.f32.mrb[39].mxu1 }
 0x1ec   : > { %v2225_v59 = vadd.f32 %v2224_v63, %v2223_v23 }
 0x1ef   : > { %v2400_v27 = vpop.f32.mrb[64].mxu0 }
 0x1f0   : > { %v1685_v36 = vadd.f32 %v2400_v27, %v2222_v29  ;;  %v2226_v14 = vpop.f32.mrb[40].mxu1  ;;  %v1676_v37 = vpop.f32.mrb[65].mxu0 }
 0x1f1   : > { %v1677_v51 = vadd.f32 %v2216_v21, %v1676_v37  ;;  %v2227_v42 = vpop.f32.mrb[41].mxu1  ;;  %v2401_v52 = vpop.f32.mrb[66].mxu0 }
 0x1f2   : > { %v1810_v53 = vmul.f32 %v3007_v46, %v1685_v36  ;;  %v2228_v58 = vadd.f32 %v2227_v42, %v2226_v14  ;;  %v1688_v31 = vadd.f32 %v2401_v52, %v2225_v59  ;;  %v2229_v24 = vpop.f32.mrb[42].mxu1  ;;  %v1679_v32 = vpop.f32.mrb[67].mxu0 }
 0x1f3   : > { %v1808_v56 = vmul.f32 %v3007_v46, %v1677_v51  ;;  %v1680_v60 = vadd.f32 %v2219_v17, %v1679_v32  ;;  %v2230_v0 = vpop.f32.mrb[43].mxu1 }
 0x1f4   : > { %v1847_v61 = vadd.f32 %v3012_v5, %v1810_v53  ;;  %v1811_v1 = vmul.f32 %v3007_v46, %v1688_v31  ;;  %v2231_v2 = vadd.f32 %v2230_v0, %v2229_v24 }
 0x1f5   : > { %v1845_v4 = vadd.f32 %v3012_v5, %v1808_v56  ;;  %v1809_v33 = vmul.f32 %v3007_v46, %v1680_v60 }
 0x1f6   : > { %v1879_v18 = vmax.f32 %v1847_v61, 0.0  ;;  %v1848_v3 = vadd.f32 %v3012_v5, %v1811_v1 }
 0x1f7   : > { %v1877_v6 = vmax.f32 %v1845_v4, 0.0  ;;  %v1846_v7 = vadd.f32 %v3012_v5, %v1809_v33 }
 0x1f8   : > { %1912 = vst.msk [vmem:[%s3023_s8 + $0x10] sm:$0xff] %vm1909_vm0, %v1879_v18  ;;  %v1880_v8 = vmax.f32 %v1848_v3, 0.0  ;;  %v2232_v28 = vpop.f32.mrb[44].mxu1 }
 0x1f9   : > { %1910 = vst.msk [vmem:[%s3023_s8] sm:$0xff] %vm1909_vm0, %v1877_v6  ;;  %v1878_v9 = vmax.f32 %v1846_v7, 0.0  ;;  %v2233_v10 = vpop.f32.mrb[45].mxu1 }
 0x1fa   : > { %1913 = vst.msk [vmem:[%s3023_s8 + $0x18] sm:$0xff] %vm1909_vm0, %v1880_v8  ;;  %v2234_v34 = vadd.f32 %v2233_v10, %v2232_v28  ;;  %v2235_v35 = vpop.f32.mrb[46].mxu1 }
 0x1fb   : > { %1911 = vst.msk [vmem:[%s3023_s8 + $0x8] sm:$0xff] %vm1909_vm0, %v1878_v9  ;;  %v2236_v11 = vpop.f32.mrb[47].mxu1 }
 0x1fc   : > { %v2237_v41 = vadd.f32 %v2236_v11, %v2235_v35 }
 0x1ff   : > { %v2404_v12 = vpop.f32.mrb[68].mxu0 }
 0x200   : > { %v1701_v13 = vadd.f32 %v2404_v12, %v2234_v34  ;;  %v2238_v43 = vpop.f32.mrb[48].mxu1  ;;  %v1692_v19 = vpop.f32.mrb[69].mxu0 }
 0x201   : > { %v1693_v15 = vadd.f32 %v2228_v58, %v1692_v19  ;;  %v2239_v44 = vpop.f32.mrb[49].mxu1  ;;  %v2405_v45 = vpop.f32.mrb[70].mxu0 }
 0x202   : > { %v1814_v26 = vmul.f32 %v3007_v46, %v1701_v13  ;;  %v2240_v39 = vadd.f32 %v2239_v44, %v2238_v43  ;;  %v1704_v47 = vadd.f32 %v2405_v45, %v2237_v41  ;;  %v2241_v48 = vpop.f32.mrb[50].mxu1  ;;  %v1695_v49 = vpop.f32.mrb[71].mxu0 }
 0x203   : > { %v1812_v50 = vmul.f32 %v3007_v46, %v1693_v15  ;;  %v1696_v30 = vadd.f32 %v2231_v2, %v1695_v49  ;;  %v2242_v54 = vpop.f32.mrb[51].mxu1 }
 0x204   : > { %v1851_v55 = vadd.f32 %v3012_v5, %v1814_v26  ;;  %v1815_v20 = vmul.f32 %v3007_v46, %v1704_v47  ;;  %v2243_v62 = vadd.f32 %v2242_v54, %v2241_v48 }
 0x205   : > { %v1849_v40 = vadd.f32 %v3012_v5, %v1812_v50  ;;  %v1813_v38 = vmul.f32 %v3007_v46, %v1696_v30 }
 0x206   : > { %v1883_v21 = vmax.f32 %v1851_v55, 0.0  ;;  %v1852_v25 = vadd.f32 %v3012_v5, %v1815_v20 }
 0x207   : > { %v1881_v57 = vmax.f32 %v1849_v40, 0.0  ;;  %v1850_v17 = vadd.f32 %v3012_v5, %v1813_v38 }
 0x208   : > { %1916 = vst.msk [vmem:[%s3023_s8 + $0x30] sm:$0xff] %vm1909_vm0, %v1883_v21  ;;  %v1884_v22 = vmax.f32 %v1852_v25, 0.0  ;;  %v2244_v16 = vpop.f32.mrb[52].mxu1 }
 0x209   : > { %1914 = vst.msk [vmem:[%s3023_s8 + $0x20] sm:$0xff] %vm1909_vm0, %v1881_v57  ;;  %v1882_v29 = vmax.f32 %v1850_v17, 0.0  ;;  %v2245_v23 = vpop.f32.mrb[53].mxu1 }
 0x20a   : > { %1917 = vst.msk [vmem:[%s3023_s8 + $0x38] sm:$0xff] %vm1909_vm0, %v1884_v22  ;;  %v2246_v63 = vadd.f32 %v2245_v23, %v2244_v16  ;;  %v2247_v59 = vpop.f32.mrb[54].mxu1 }
 0x20b   : > { %1915 = vst.msk [vmem:[%s3023_s8 + $0x28] sm:$0xff] %vm1909_vm0, %v1882_v29  ;;  %v2248_v27 = vpop.f32.mrb[55].mxu1 }
 0x20c   : > { %v2249_v36 = vadd.f32 %v2248_v27, %v2247_v59 }
 0x20f   : > { %v2408_v14 = vpop.f32.mrb[72].mxu0 }
 0x210   : > { %v1717_v37 = vadd.f32 %v2408_v14, %v2246_v63  ;;  %v2250_v51 = vpop.f32.mrb[56].mxu1  ;;  %v1708_v42 = vpop.f32.mrb[73].mxu0 }
 0x211   : > { %v1709_v52 = vadd.f32 %v2240_v39, %v1708_v42  ;;  %v2251_v53 = vpop.f32.mrb[57].mxu1  ;;  %v2409_v58 = vpop.f32.mrb[74].mxu0 }
 0x212   : > { %v1818_v31 = vmul.f32 %v3007_v46, %v1717_v37  ;;  %v2252_v24 = vadd.f32 %v2251_v53, %v2250_v51  ;;  %v1720_v32 = vadd.f32 %v2409_v58, %v2249_v36  ;;  %v2253_v56 = vpop.f32.mrb[58].mxu1  ;;  %v1711_v60 = vpop.f32.mrb[75].mxu0 }
 0x213   : > { %v1816_v0 = vmul.f32 %v3007_v46, %v1709_v52  ;;  %v1712_v61 = vadd.f32 %v2243_v62, %v1711_v60  ;;  %v2254_v1 = vpop.f32.mrb[59].mxu1 }
 0x214   : > { %v1855_v2 = vadd.f32 %v3012_v5, %v1818_v31  ;;  %v1819_v4 = vmul.f32 %v3007_v46, %v1720_v32  ;;  %v2255_v33 = vadd.f32 %v2254_v1, %v2253_v56 }
 0x215   : > { %v1853_v18 = vadd.f32 %v3012_v5, %v1816_v0  ;;  %v1817_v3 = vmul.f32 %v3007_v46, %v1712_v61 }
 0x216   : > { %v1887_v6 = vmax.f32 %v1855_v2, 0.0  ;;  %v1856_v7 = vadd.f32 %v3012_v5, %v1819_v4 }
 0x217   : > { %v1885_v8 = vmax.f32 %v1853_v18, 0.0  ;;  %v1854_v28 = vadd.f32 %v3012_v5, %v1817_v3 }
 0x218   : > { %1920 = vst.msk [vmem:[%s3023_s8 + $0x50] sm:$0xff] %vm1909_vm0, %v1887_v6  ;;  %v1888_v9 = vmax.f32 %v1856_v7, 0.0  ;;  %v2256_v10 = vpop.f32.mrb[60].mxu1 }
 0x219   : > { %1918 = vst.msk [vmem:[%s3023_s8 + $0x40] sm:$0xff] %vm1909_vm0, %v1885_v8  ;;  %v1886_v34 = vmax.f32 %v1854_v28, 0.0  ;;  %v2257_v35 = vpop.f32.mrb[61].mxu1 }
 0x21a   : > { %1921 = vst.msk [vmem:[%s3023_s8 + $0x58] sm:$0xff] %vm1909_vm0, %v1888_v9  ;;  %v2258_v11 = vadd.f32 %v2257_v35, %v2256_v10  ;;  %v2259_v41 = vpop.f32.mrb[62].mxu1 }
 0x21b   : > { %1919 = vst.msk [vmem:[%s3023_s8 + $0x48] sm:$0xff] %vm1909_vm0, %v1886_v34  ;;  %v2260_v12 = vpop.f32.mrb[63].mxu1 }
 0x21c   : > { %v2261_v13 = vadd.f32 %v2260_v12, %v2259_v41 }
 0x21f   : > { %v2412_v43 = vpop.f32.mrb[76].mxu0 }
 0x220   : > { %v1733_v19 = vadd.f32 %v2412_v43, %v2258_v11  ;;  %v2262_v15 = vpop.f32.mrb[64].mxu1  ;;  %v1724_v44 = vpop.f32.mrb[77].mxu0 }
 0x221   : > { %v1725_v45 = vadd.f32 %v2252_v24, %v1724_v44  ;;  %v2263_v26 = vpop.f32.mrb[65].mxu1  ;;  %v2413_v39 = vpop.f32.mrb[78].mxu0 }
 0x222   : > { %v1822_v47 = vmul.f32 %v3007_v46, %v1733_v19  ;;  %v2264_v48 = vadd.f32 %v2263_v26, %v2262_v15  ;;  %v1736_v49 = vadd.f32 %v2413_v39, %v2261_v13  ;;  %v2265_v50 = vpop.f32.mrb[66].mxu1  ;;  %v1727_v30 = vpop.f32.mrb[79].mxu0 }
 0x223   : > { %v1820_v54 = vmul.f32 %v3007_v46, %v1725_v45  ;;  %v1728_v55 = vadd.f32 %v2255_v33, %v1727_v30  ;;  %v2266_v20 = vpop.f32.mrb[67].mxu1 }
 0x224   : > { %v1859_v62 = vadd.f32 %v3012_v5, %v1822_v47  ;;  %v1823_v40 = vmul.f32 %v3007_v46, %v1736_v49  ;;  %v2267_v38 = vadd.f32 %v2266_v20, %v2265_v50 }
 0x225   : > { %v1857_v21 = vadd.f32 %v3012_v5, %v1820_v54  ;;  %v1821_v25 = vmul.f32 %v3007_v46, %v1728_v55 }
 0x226   : > { %v1891_v57 = vmax.f32 %v1859_v62, 0.0  ;;  %v1860_v17 = vadd.f32 %v3012_v5, %v1823_v40 }
 0x227   : > { %v1889_v22 = vmax.f32 %v1857_v21, 0.0  ;;  %v1858_v16 = vadd.f32 %v3012_v5, %v1821_v25 }
 0x228   : > { %1924 = vst.msk [vmem:[%s3023_s8 + $0x70] sm:$0xff] %vm1909_vm0, %v1891_v57  ;;  %v1892_v29 = vmax.f32 %v1860_v17, 0.0  ;;  %v2268_v23 = vpop.f32.mrb[68].mxu1 }
 0x229   : > { %1922 = vst.msk [vmem:[%s3023_s8 + $0x60] sm:$0xff] %vm1909_vm0, %v1889_v22  ;;  %v1890_v63 = vmax.f32 %v1858_v16, 0.0  ;;  %v2269_v59 = vpop.f32.mrb[69].mxu1 }
 0x22a   : > { %1925 = vst.msk [vmem:[%s3023_s8 + $0x78] sm:$0xff] %vm1909_vm0, %v1892_v29  ;;  %v2270_v27 = vadd.f32 %v2269_v59, %v2268_v23  ;;  %v2271_v36 = vpop.f32.mrb[70].mxu1 }
 0x22b   : > { %1923 = vst.msk [vmem:[%s3023_s8 + $0x68] sm:$0xff] %vm1909_vm0, %v1890_v63  ;;  %v2272_v14 = vpop.f32.mrb[71].mxu1 }
 0x22c   : > { %v2273_v37 = vadd.f32 %v2272_v14, %v2271_v36 }
 0x22f   : > { %v2416_v51 = vpop.f32.mrb[80].mxu0 }
 0x230   : > { %v1749_v42 = vadd.f32 %v2416_v51, %v2270_v27  ;;  %v2274_v52 = vpop.f32.mrb[72].mxu1  ;;  %v1740_v53 = vpop.f32.mrb[81].mxu0 }
 0x231   : > { %v1741_v58 = vadd.f32 %v2264_v48, %v1740_v53  ;;  %v2275_v31 = vpop.f32.mrb[73].mxu1  ;;  %v2417_v24 = vpop.f32.mrb[82].mxu0 }
 0x232   : > { %v1826_v32 = vmul.f32 %v3007_v46, %v1749_v42  ;;  %v2276_v56 = vadd.f32 %v2275_v31, %v2274_v52  ;;  %v1752_v60 = vadd.f32 %v2417_v24, %v2273_v37  ;;  %v2277_v0 = vpop.f32.mrb[74].mxu1  ;;  %v1743_v61 = vpop.f32.mrb[83].mxu0 }
 0x233   : > { %v1824_v1 = vmul.f32 %v3007_v46, %v1741_v58  ;;  %v1744_v2 = vadd.f32 %v2267_v38, %v1743_v61  ;;  %v2278_v4 = vpop.f32.mrb[75].mxu1 }
 0x234   : > { %v1863_v33 = vadd.f32 %v3012_v5, %v1826_v32  ;;  %v1827_v18 = vmul.f32 %v3007_v46, %v1752_v60  ;;  %v2279_v3 = vadd.f32 %v2278_v4, %v2277_v0 }
 0x235   : > { %v1861_v6 = vadd.f32 %v3012_v5, %v1824_v1  ;;  %v1825_v7 = vmul.f32 %v3007_v46, %v1744_v2 }
 0x236   : > { %v1895_v8 = vmax.f32 %v1863_v33, 0.0  ;;  %v1864_v28 = vadd.f32 %v3012_v5, %v1827_v18 }
 0x237   : > { %v1893_v9 = vmax.f32 %v1861_v6, 0.0  ;;  %v1862_v10 = vadd.f32 %v3012_v5, %v1825_v7 }
 0x238   : > { %1928 = vst.msk [vmem:[%s3023_s8 + $0x90] sm:$0xff] %vm1909_vm0, %v1895_v8  ;;  %v1896_v34 = vmax.f32 %v1864_v28, 0.0  ;;  %v2280_v35 = vpop.f32.mrb[76].mxu1 }
 0x239   : > { %1926 = vst.msk [vmem:[%s3023_s8 + $0x80] sm:$0xff] %vm1909_vm0, %v1893_v9  ;;  %v1894_v11 = vmax.f32 %v1862_v10, 0.0  ;;  %v2281_v41 = vpop.f32.mrb[77].mxu1 }
 0x23a   : > { %1929 = vst.msk [vmem:[%s3023_s8 + $0x98] sm:$0xff] %vm1909_vm0, %v1896_v34  ;;  %v2282_v12 = vadd.f32 %v2281_v41, %v2280_v35  ;;  %v2283_v13 = vpop.f32.mrb[78].mxu1 }
 0x23b   : > { %1927 = vst.msk [vmem:[%s3023_s8 + $0x88] sm:$0xff] %vm1909_vm0, %v1894_v11  ;;  %v2284_v43 = vpop.f32.mrb[79].mxu1 }
 0x23c   : > { %v2285_v19 = vadd.f32 %v2284_v43, %v2283_v13 }
 0x23f   : > { %v2420_v15 = vpop.f32.mrb[84].mxu0 }
 0x240   : > { %v1765_v44 = vadd.f32 %v2420_v15, %v2282_v12  ;;  %v2286_v45 = vpop.f32.mrb[80].mxu1  ;;  %v1756_v26 = vpop.f32.mrb[85].mxu0 }
 0x241   : > { %v1757_v39 = vadd.f32 %v2276_v56, %v1756_v26  ;;  %v2287_v47 = vpop.f32.mrb[81].mxu1  ;;  %v2421_v48 = vpop.f32.mrb[86].mxu0 }
 0x242   : > { %v1830_v49 = vmul.f32 %v3007_v46, %v1765_v44  ;;  %v2288_v50 = vadd.f32 %v2287_v47, %v2286_v45  ;;  %v1768_v30 = vadd.f32 %v2421_v48, %v2285_v19  ;;  %v2289_v54 = vpop.f32.mrb[82].mxu1  ;;  %v1759_v55 = vpop.f32.mrb[87].mxu0 }
 0x243   : > { %v1828_v20 = vmul.f32 %v3007_v46, %v1757_v39  ;;  %v1760_v62 = vadd.f32 %v2279_v3, %v1759_v55  ;;  %v2290_v40 = vpop.f32.mrb[83].mxu1 }
 0x244   : > { %v1867_v38 = vadd.f32 %v3012_v5, %v1830_v49  ;;  %v1831_v21 = vmul.f32 %v3007_v46, %v1768_v30  ;;  %v2291_v25 = vadd.f32 %v2290_v40, %v2289_v54 }
 0x245   : > { %v1865_v57 = vadd.f32 %v3012_v5, %v1828_v20  ;;  %v1829_v17 = vmul.f32 %v3007_v46, %v1760_v62 }
 0x246   : > { %v1899_v22 = vmax.f32 %v1867_v38, 0.0  ;;  %v1868_v16 = vadd.f32 %v3012_v5, %v1831_v21 }
 0x247   : > { %v1897_v29 = vmax.f32 %v1865_v57, 0.0  ;;  %v1866_v23 = vadd.f32 %v3012_v5, %v1829_v17 }
 0x248   : > { %1932 = vst.msk [vmem:[%s3023_s8 + $0xb0] sm:$0xff] %vm1909_vm0, %v1899_v22  ;;  %v1900_v63 = vmax.f32 %v1868_v16, 0.0  ;;  %v2292_v59 = vpop.f32.mrb[84].mxu1 }
 0x249   : > { %1930 = vst.msk [vmem:[%s3023_s8 + $0xa0] sm:$0xff] %vm1909_vm0, %v1897_v29  ;;  %v1898_v27 = vmax.f32 %v1866_v23, 0.0  ;;  %v2293_v36 = vpop.f32.mrb[85].mxu1 }
 0x24a   : > { %1933 = vst.msk [vmem:[%s3023_s8 + $0xb8] sm:$0xff] %vm1909_vm0, %v1900_v63  ;;  %v2294_v14 = vadd.f32 %v2293_v36, %v2292_v59  ;;  %v2295_v37 = vpop.f32.mrb[86].mxu1 }
 0x24b   : > { %1931 = vst.msk [vmem:[%s3023_s8 + $0xa8] sm:$0xff] %vm1909_vm0, %v1898_v27  ;;  %v2296_v51 = vpop.f32.mrb[87].mxu1 }
 0x24c   : > { %v2297_v42 = vadd.f32 %v2296_v51, %v2295_v37 }
 0x24f   : > { %v2424_v52 = vpop.f32.mrb[88].mxu0 }
 0x250   : > { %v1781_v53 = vadd.f32 %v2424_v52, %v2294_v14  ;;  %v2298_v58 = vpop.f32.mrb[88].mxu1  ;;  %v1772_v31 = vpop.f32.mrb[89].mxu0 }
 0x251   : > { %v1773_v24 = vadd.f32 %v2288_v50, %v1772_v31  ;;  %v2299_v32 = vpop.f32.mrb[89].mxu1  ;;  %v2425_v56 = vpop.f32.mrb[90].mxu0 }
 0x252   : > { %v1834_v60 = vmul.f32 %v3007_v46, %v1781_v53  ;;  %v2300_v0 = vadd.f32 %v2299_v32, %v2298_v58  ;;  %v1784_v61 = vadd.f32 %v2425_v56, %v2297_v42  ;;  %v2301_v1 = vpop.f32.mrb[90].mxu1  ;;  %v1775_v2 = vpop.f32.mrb[91].mxu0 }
 0x253   : > { %v1832_v4 = vmul.f32 %v3007_v46, %v1773_v24  ;;  %v1776_v33 = vadd.f32 %v2291_v25, %v1775_v2  ;;  %v2302_v18 = vpop.f32.mrb[91].mxu1 }
 0x254   : > { %v1871_v3 = vadd.f32 %v3012_v5, %v1834_v60  ;;  %v1835_v6 = vmul.f32 %v3007_v46, %v1784_v61  ;;  %v2303_v7 = vadd.f32 %v2302_v18, %v2301_v1 }
 0x255   : > { %v1869_v8 = vadd.f32 %v3012_v5, %v1832_v4  ;;  %v1833_v28 = vmul.f32 %v3007_v46, %v1776_v33 }
 0x256   : > { %v1903_v9 = vmax.f32 %v1871_v3, 0.0  ;;  %v1872_v10 = vadd.f32 %v3012_v5, %v1835_v6 }
 0x257   : > { %v1901_v34 = vmax.f32 %v1869_v8, 0.0  ;;  %v1870_v35 = vadd.f32 %v3012_v5, %v1833_v28 }
 0x258   : > { %1936 = vst.msk [vmem:[%s3023_s8 + $0xd0] sm:$0xff] %vm1909_vm0, %v1903_v9  ;;  %v1904_v11 = vmax.f32 %v1872_v10, 0.0  ;;  %v2304_v41 = vpop.f32.mrb[92].mxu1  ;;  %v2428_v12 = vpop.f32.mrb[92].mxu0 }
 0x259   : > { %1934 = vst.msk [vmem:[%s3023_s8 + $0xc0] sm:$0xff] %vm1909_vm0, %v1901_v34  ;;  %v1902_v13 = vmax.f32 %v1870_v35, 0.0  ;;  %v2305_v43 = vpop.f32.mrb[93].mxu1  ;;  %v1788_v19 = vpop.f32.mrb[93].mxu0 }
 0x25a   : > { %1937 = vst.msk [vmem:[%s3023_s8 + $0xd8] sm:$0xff] %vm1909_vm0, %v1904_v11  ;;  %v2306_v15 = vadd.f32 %v2305_v43, %v2304_v41  ;;  %v1789_v44 = vadd.f32 %v2300_v0, %v1788_v19  ;;  %v2307_v45 = vpop.f32.mrb[94].mxu1  ;;  %v2429_v26 = vpop.f32.mrb[94].mxu0 }
 0x25b   : > { %1935 = vst.msk [vmem:[%s3023_s8 + $0xc8] sm:$0xff] %vm1909_vm0, %v1902_v13  ;;  %v2308_v39 = vpop.f32.mrb[95].mxu1  ;;  %v1791_v47 = vpop.f32.mrb[95].mxu0 }
 0x25c   : > { %v1797_v48 = vadd.f32 %v2428_v12, %v2306_v15  ;;  %v1836_v49 = vmul.f32 %v3007_v46, %v1789_v44  ;;  %v2309_v50 = vadd.f32 %v2308_v39, %v2307_v45  ;;  %v1792_v30 = vadd.f32 %v2303_v7, %v1791_v47 }
 0x25e   : > { %v1838_v54 = vmul.f32 %v3007_v46, %v1797_v48  ;;  %v1873_v55 = vadd.f32 %v3012_v5, %v1836_v49  ;;  %v1800_v20 = vadd.f32 %v2429_v26, %v2309_v50  ;;  %v1837_v62 = vmul.f32 %v3007_v46, %v1792_v30 }
 0x260   : > { %v1875_v40 = vadd.f32 %v3012_v5, %v1838_v54  ;;  %v1905_v38 = vmax.f32 %v1873_v55, 0.0  ;;  %v1839_v21 = vmul.f32 %v3007_v46, %v1800_v20  ;;  %v1874_v25 = vadd.f32 %v3012_v5, %v1837_v62 }
 0x262   : > { %v1907_v57 = vmax.f32 %v1875_v40, 0.0  ;;  %1938 = vst.msk [vmem:[%s3023_s8 + $0xe0] sm:$0xff] %vm1909_vm0, %v1905_v38  ;;  %v1876_v17 = vadd.f32 %v3012_v5, %v1839_v21  ;;  %v1906_v22 = vmax.f32 %v1874_v25, 0.0 }
 0x264   : > { %1940 = vst.msk [vmem:[%s3023_s8 + $0xf0] sm:$0xff] %vm1909_vm0, %v1907_v57  ;;  %v1908_v16 = vmax.f32 %v1876_v17, 0.0  ;;  %1939 = vst.msk [vmem:[%s3023_s8 + $0xe8] sm:$0xff] %vm1909_vm0, %v1906_v22 }
 0x266   : > { %1941 = vst.msk [vmem:[%s3023_s8 + $0xf8] sm:$0xff] %vm1909_vm0, %v1908_v16 }
 0x267 PF: > { %s14_s15 = sadd.s32 1, %s2494_s15  }
 0x268   : > { %p11_p4 = scmp.ge.s32.totalorder %s14_s15, 4  }
 0x26a   :  { %13 = sbr.rel (!%p11_p4) target bundleno = 1 (0x1), region = 68 }

</bundles_post_ra>
